<compile_context>
chip_gen: v7x
topology: tpu7x:2x2x1
jax: 0.10.0
libtpu: 0.0.40
codegen_flags: <defaults>
</compile_context>

<pallas_src>
import jax
import jax.numpy as jnp
from jax.experimental import pallas as pl
from jax.experimental.pallas import tpu as pltpu

LANE = 128


def _round_up(v, m):
    return (v + m - 1) // m * m


# ----------------------------------------------------------------------------
# Kernel: full sequence recurrence + final fc, one grid step per timestep.
# ----------------------------------------------------------------------------
def gru_seq_kernel(x_ref, wx_ref, wh_ref, b_ref, wfc_ref, bfc_ref,
                   out_ref, h_ref):
    t = pl.program_id(0)

    @pl.when(t == 0)
    def _init():
        h_ref[...] = jnp.zeros_like(h_ref)

    x = x_ref[0]            # (B, I)   current timestep
    h = h_ref[...]          # (B, Hp)  VMEM-resident hidden state
    hp = h_ref.shape[1]     # padded hidden width (static)

    # Fused z/n pre-activations: [z_pre | n_pre] = x@Wx + h@Wh + b
    pre = (jnp.dot(x, wx_ref[...], preferred_element_type=jnp.float32)
           + jnp.dot(h, wh_ref[...], preferred_element_type=jnp.float32)
           + b_ref[...])

    z = jax.nn.sigmoid(pre[:, :hp])
    n = jnp.tanh(pre[:, hp:])          # reference never applies r here
    h_new = (1.0 - z) * n + z * h
    h_ref[...] = h_new

    @pl.when(t == pl.num_programs(0) - 1)
    def _finalize():
        out_ref[...] = (jnp.dot(h_new, wfc_ref[...],
                                preferred_element_type=jnp.float32)
                        + bfc_ref[...]).astype(out_ref.dtype)


# ----------------------------------------------------------------------------
# One-time parameter packing (kept OUT of the per-call hot path).
# ----------------------------------------------------------------------------
def pack_gru_params(params, input_size, hidden_size, output_size):
    H, O = hidden_size, output_size
    Hp = _round_up(H, LANE)
    Op = _round_up(O, LANE)
    f32 = jnp.float32

    # x-path weights for [z | n], transposed to (I, 2*Hp), zero padded.
    wx = jnp.zeros((input_size, 2 * Hp), f32)
    wx = wx.at[:, :H].set(params["update_i2z_w"].T)
    wx = wx.at[:, Hp:Hp + H].set(params["output_i2n_w"].T)

    # h-path weights for [z | n], (Hp, 2*Hp), zero padded.
    wh = jnp.zeros((Hp, 2 * Hp), f32)
    wh = wh.at[:H, :H].set(params["update_h2z_w"].T)
    wh = wh.at[:H, Hp:Hp + H].set(params["output_h2n_w"].T)

    # Pre-summed biases (b_i + b_h) for each gate.
    b = jnp.zeros((1, 2 * Hp), f32)
    b = b.at[0, :H].set(params["update_i2z_b"] + params["update_h2z_b"])
    b = b.at[0, Hp:Hp + H].set(params["output_i2n_b"] + params["output_h2n_b"])

    # Final fc layer, padded to lane-dense output.
    wfc = jnp.zeros((Hp, Op), f32).at[:H, :O].set(params["fc_w"].T)
    bfc = jnp.zeros((1, Op), f32).at[0, :O].set(params["fc_b"])

    return {"wx": wx, "wh": wh, "b": b, "wfc": wfc, "bfc": bfc,
            "output_size": O}


# ----------------------------------------------------------------------------
# Forward wrapper.
# ----------------------------------------------------------------------------
def gru_forward(x, packed):
    """x: (B, T, I) -> (B, output_size). packed: from pack_gru_params."""
    B, T, I = x.shape
    Hp = packed["wx"].shape[1] // 2
    Op = packed["wfc"].shape[1]
    O = packed["output_size"]

    xt = jnp.transpose(x, (1, 0, 2))  # time-major (T, B, I) for per-step tiles

    out_padded = pl.pallas_call(
        gru_seq_kernel,
        out_shape=jax.ShapeDtypeStruct((B, Op), jnp.float32),
        grid_spec=pltpu.PrefetchScalarGridSpec(
            num_scalar_prefetch=0,
            grid=(T,),
            in_specs=[
                pl.BlockSpec((1, B, I), lambda t: (t, 0, 0)),       # x_t
                pl.BlockSpec((I, 2 * Hp), lambda t: (0, 0)),        # Wx (resident)
                pl.BlockSpec((Hp, 2 * Hp), lambda t: (0, 0)),       # Wh (resident)
                pl.BlockSpec((1, 2 * Hp), lambda t: (0, 0)),        # bias
                pl.BlockSpec((Hp, Op), lambda t: (0, 0)),           # Wfc
                pl.BlockSpec((1, Op), lambda t: (0, 0)),            # bfc
            ],
            out_specs=pl.BlockSpec((B, Op), lambda t: (0, 0)),
            scratch_shapes=[pltpu.VMEM((B, Hp), jnp.float32)],      # hidden state
        ),
        compiler_params=pltpu.CompilerParams(
            dimension_semantics=("arbitrary",)),                    # recurrence
    )(xt, packed["wx"], packed["wh"], packed["b"],
      packed["wfc"], packed["bfc"])

    return out_padded[:, :O]


# ----------------------------------------------------------------------------
# Init matching the module (xavier_uniform on weights and on (1, n) bias views)
# and a pure-JAX reference of the PyTorch forward.
# ----------------------------------------------------------------------------
def xavier_uniform(key, shape, dtype=jnp.float32):
    fan_out, fan_in = shape
    bound = (6.0 / (fan_in + fan_out)) ** 0.5
    return jax.random.uniform(key, shape, dtype, minval=-bound, maxval=bound)


def init_gru_params(key, input_size, hidden_size, output_size):
    names = [("reset_i2r", input_size, hidden_size),
             ("reset_h2r", hidden_size, hidden_size),
             ("update_i2z", input_size, hidden_size),
             ("update_h2z", hidden_size, hidden_size),
             ("output_i2n", input_size, hidden_size),
             ("output_h2n", hidden_size, hidden_size),
             ("fc", hidden_size, output_size)]
    params = {}
    keys = jax.random.split(key, 2 * len(names))
    for i, (name, in_feat, out_feat) in enumerate(names):
        wkey, bkey = keys[2 * i], keys[2 * i + 1]
        params[f"{name}_w"] = xavier_uniform(wkey, (out_feat, in_feat))
        params[f"{name}_b"] = xavier_uniform(bkey, (1, out_feat)).reshape(out_feat)
    return params


def gru_reference(x, params, hidden_size):
    """Pure-JAX mirror of GRU.forward (reset gate computed but unused)."""
    B, T, _ = x.shape
    h = jnp.zeros((B, hidden_size), jnp.float32)
    lin = lambda v, w, bb: v @ w.T + bb
    for t in range(T):
        xt = x[:, t, :]
        r = jax.nn.sigmoid(lin(xt, params["reset_i2r_w"], params["reset_i2r_b"])
                           + lin(h, params["reset_h2r_w"], params["reset_h2r_b"]))
        del r  # matches reference: r never feeds the output path
        z = jax.nn.sigmoid(lin(xt, params["update_i2z_w"], params["update_i2z_b"])
                           + lin(h, params["update_h2z_w"], params["update_h2z_b"]))
        n = jnp.tanh(lin(xt, params["output_i2n_w"], params["output_i2n_b"])
                     + lin(h, params["output_h2n_w"], params["output_h2n_b"]))
        h = (1.0 - z) * n + z * h
    return h @ params["fc_w"].T + params["fc_b"]


if __name__ == "__main__":
    jax.config.update("jax_default_matmul_precision", "highest")

    batch, seq_len = 8, 8
    input_size, hidden_size, output_size = 16, 32, 16

    key = jax.random.PRNGKey(0)
    kx, kp = jax.random.split(key)
    x = jax.random.normal(kx, (batch, seq_len, input_size), dtype=jnp.float32)
    params = init_gru_params(kp, input_size, hidden_size, output_size)

    packed = pack_gru_params(params, input_size, hidden_size, output_size)

    out = jax.block_until_ready(gru_forward(x, packed))
    ref = jax.block_until_ready(gru_reference(x, params, hidden_size))

    assert out.shape == (batch, output_size), out.shape
    assert jnp.allclose(out, ref, atol=1e-4, rtol=1e-4), \
        f"mismatch vs reference, max abs err {jnp.max(jnp.abs(out - ref))}"

    print("KERNEL_OK")
</pallas_src>

<mosaic_0001>
module attributes {stable_mosaic.version = 11 : i64} {
  func.func @gru_seq_kernel(%arg0: i32, %arg1: memref<1x8x16xf32, #tpu.memory_space<vmem>>, %arg2: memref<16x256xf32, #tpu.memory_space<vmem>>, %arg3: memref<128x256xf32, #tpu.memory_space<vmem>>, %arg4: memref<1x256xf32, #tpu.memory_space<vmem>>, %arg5: memref<128x128xf32, #tpu.memory_space<vmem>>, %arg6: memref<1x128xf32, #tpu.memory_space<vmem>>, %arg7: memref<8x128xf32, #tpu.memory_space<vmem>>, %arg8: memref<8x128xf32, #tpu.memory_space<vmem>>) attributes {dimension_semantics = [#tpu.dimension_semantics<arbitrary>], iteration_bounds = array<i64: 8>, scalar_prefetch = 0 : i64, scratch_operands = 1 : i64, tpu.core_type = #tpu.core_type<tc>, window_params = [{transform_indices = @transform_0, window_bounds = array<i64: 1, 8, 16>}, {pipeline_mode = #tpu.pipeline_mode<synchronous>, transform_indices = @transform_1, window_bounds = array<i64: 16, 256>}, {pipeline_mode = #tpu.pipeline_mode<synchronous>, transform_indices = @transform_2, window_bounds = array<i64: 128, 256>}, {pipeline_mode = #tpu.pipeline_mode<synchronous>, transform_indices = @transform_3, window_bounds = array<i64: 1, 256>}, {pipeline_mode = #tpu.pipeline_mode<synchronous>, transform_indices = @transform_4, window_bounds = array<i64: 128, 128>}, {pipeline_mode = #tpu.pipeline_mode<synchronous>, transform_indices = @transform_5, window_bounds = array<i64: 1, 128>}, {pipeline_mode = #tpu.pipeline_mode<synchronous>, transform_indices = @transform_6, window_bounds = array<i64: 8, 128>}]} {
    %c0_i32 = arith.constant 0 : i32
    %0 = arith.cmpi eq, %arg0, %c0_i32 : i32
    %1 = arith.extui %0 : i1 to i32
    %c0_i32_0 = arith.constant 0 : i32
    %2 = arith.cmpi ne, %1, %c0_i32_0 : i32
    scf.if %2 {
      %cst_17 = arith.constant 0.000000e+00 : f32
      %31 = vector.broadcast %cst_17 : f32 to vector<8x128xf32>
      %c0_18 = arith.constant 0 : index
      %c0_19 = arith.constant 0 : index
      %32 = vector.load %arg8[%c0_18, %c0_19] : memref<8x128xf32, #tpu.memory_space<vmem>>, vector<8x128xf32>
      tpu.vector_store %arg8[%c0_18, %c0_19], %31 {strides = array<i32>} : memref<8x128xf32, #tpu.memory_space<vmem>>, vector<8x128xf32>,
    } else {
    }
    %c0 = arith.constant 0 : index
    %c0_1 = arith.constant 0 : index
    %c0_2 = arith.constant 0 : index
    %3 = vector.load %arg1[%c0, %c0_1, %c0_2] : memref<1x8x16xf32, #tpu.memory_space<vmem>>, vector<1x8x16xf32>
    %4 = vector.shape_cast %3 : vector<1x8x16xf32> to vector<8x16xf32>
    %c0_3 = arith.constant 0 : index
    %c0_4 = arith.constant 0 : index
    %5 = vector.load %arg8[%c0_3, %c0_4] : memref<8x128xf32, #tpu.memory_space<vmem>>, vector<8x128xf32>
    %c0_5 = arith.constant 0 : index
    %c0_6 = arith.constant 0 : index
    %6 = vector.load %arg2[%c0_5, %c0_6] : memref<16x256xf32, #tpu.memory_space<vmem>>, vector<16x256xf32>
    %cst = arith.constant dense<0.000000e+00> : vector<8x256xf32>
    %7 = tpu.matmul %4, %6, %cst {dimension_numbers = #tpu.dot_dimension_numbers<[1], [0], [0], [1], [0, 0, 1, 1], [], []>, precision = #tpu.contract_precision<fp32>} : vector<8x16xf32>, vector<16x256xf32>, vector<8x256xf32> -> vector<8x256xf32>
    %c0_7 = arith.constant 0 : index
    %c0_8 = arith.constant 0 : index
    %8 = vector.load %arg3[%c0_7, %c0_8] : memref<128x256xf32, #tpu.memory_space<vmem>>, vector<128x256xf32>
    %cst_9 = arith.constant dense<0.000000e+00> : vector<8x256xf32>
    %9 = tpu.matmul %5, %8, %cst_9 {dimension_numbers = #tpu.dot_dimension_numbers<[1], [0], [0], [1], [0, 0, 1, 1], [], []>, precision = #tpu.contract_precision<fp32>} : vector<8x128xf32>, vector<128x256xf32>, vector<8x256xf32> -> vector<8x256xf32>
    %10 = arith.addf %7, %9 : vector<8x256xf32>
    %c0_10 = arith.constant 0 : index
    %c0_11 = arith.constant 0 : index
    %11 = vector.load %arg4[%c0_10, %c0_11] : memref<1x256xf32, #tpu.memory_space<vmem>>, vector<1x256xf32>
    %12 = vector.broadcast %11 : vector<1x256xf32> to vector<8x256xf32>
    %13 = arith.addf %10, %12 : vector<8x256xf32>
    %14 = vector.extract_strided_slice %13 {offsets = [0, 0], sizes = [8, 128], strides = [1, 1]} : vector<8x256xf32> to vector<8x128xf32>
    %15 = arith.negf %14 : vector<8x128xf32>
    %16 = math.exp %15 : vector<8x128xf32>
    %cst_12 = arith.constant 1.000000e+00 : f32
    %17 = vector.broadcast %cst_12 : f32 to vector<8x128xf32>
    %18 = arith.addf %17, %16 : vector<8x128xf32>
    %19 = arith.divf %17, %18 : vector<8x128xf32>
    %20 = vector.extract_strided_slice %13 {offsets = [0, 128], sizes = [8, 128], strides = [1, 1]} : vector<8x256xf32> to vector<8x128xf32>
    %21 = math.tanh %20 : vector<8x128xf32>
    %cst_13 = arith.constant 1.000000e+00 : f32
    %22 = vector.broadcast %cst_13 : f32 to vector<8x128xf32>
    %23 = arith.subf %22, %19 : vector<8x128xf32>
    %24 = arith.mulf %23, %21 : vector<8x128xf32>
    %25 = arith.mulf %19, %5 : vector<8x128xf32>
    %26 = arith.addf %24, %25 : vector<8x128xf32>
    %c0_14 = arith.constant 0 : index
    %c0_15 = arith.constant 0 : index
    %27 = vector.load %arg8[%c0_14, %c0_15] : memref<8x128xf32, #tpu.memory_space<vmem>>, vector<8x128xf32>
    tpu.vector_store %arg8[%c0_14, %c0_15], %26 {strides = array<i32>} : memref<8x128xf32, #tpu.memory_space<vmem>>, vector<8x128xf32>,
    %c7_i32 = arith.constant 7 : i32
    %28 = arith.cmpi eq, %arg0, %c7_i32 : i32
    %29 = arith.extui %28 : i1 to i32
    %c0_i32_16 = arith.constant 0 : i32
    %30 = arith.cmpi ne, %29, %c0_i32_16 : i32
    scf.if %30 {
      %c0_17 = arith.constant 0 : index
      %c0_18 = arith.constant 0 : index
      %31 = vector.load %arg5[%c0_17, %c0_18] : memref<128x128xf32, #tpu.memory_space<vmem>>, vector<128x128xf32>
      %cst_19 = arith.constant dense<0.000000e+00> : vector<8x128xf32>
      %32 = tpu.matmul %26, %31, %cst_19 {dimension_numbers = #tpu.dot_dimension_numbers<[1], [0], [0], [1], [0, 0, 1, 1], [], []>, precision = #tpu.contract_precision<fp32>} : vector<8x128xf32>, vector<128x128xf32>, vector<8x128xf32> -> vector<8x128xf32>
      %c0_20 = arith.constant 0 : index
      %c0_21 = arith.constant 0 : index
      %33 = vector.load %arg6[%c0_20, %c0_21] : memref<1x128xf32, #tpu.memory_space<vmem>>, vector<1x128xf32>
      %34 = vector.broadcast %33 : vector<1x128xf32> to vector<8x128xf32>
      %35 = arith.addf %32, %34 : vector<8x128xf32>
      %c0_22 = arith.constant 0 : index
      %c0_23 = arith.constant 0 : index
      %36 = vector.load %arg7[%c0_22, %c0_23] : memref<8x128xf32, #tpu.memory_space<vmem>>, vector<8x128xf32>
      tpu.vector_store %arg7[%c0_22, %c0_23], %35 {strides = array<i32>} : memref<8x128xf32, #tpu.memory_space<vmem>>, vector<8x128xf32>,
    } else {
    }
    return
  }
  func.func @transform_0(%arg0: i32) -> (i32, i32, i32) {
    %c0_i32 = arith.constant 0 : i32
    %c0_i32_0 = arith.constant 0 : i32
    %c0_i32_1 = arith.constant 0 : i32
    return %arg0, %c0_i32, %c0_i32_0 : i32, i32, i32
  }
  func.func @transform_1(%arg0: i32) -> (i32, i32) {
    %c0_i32 = arith.constant 0 : i32
    %c0_i32_0 = arith.constant 0 : i32
    %c0_i32_1 = arith.constant 0 : i32
    return %c0_i32, %c0_i32_0 : i32, i32
  }
  func.func @transform_2(%arg0: i32) -> (i32, i32) {
    %c0_i32 = arith.constant 0 : i32
    %c0_i32_0 = arith.constant 0 : i32
    %c0_i32_1 = arith.constant 0 : i32
    return %c0_i32, %c0_i32_0 : i32, i32
  }
  func.func @transform_3(%arg0: i32) -> (i32, i32) {
    %c0_i32 = arith.constant 0 : i32
    %c0_i32_0 = arith.constant 0 : i32
    %c0_i32_1 = arith.constant 0 : i32
    return %c0_i32, %c0_i32_0 : i32, i32
  }
  func.func @transform_4(%arg0: i32) -> (i32, i32) {
    %c0_i32 = arith.constant 0 : i32
    %c0_i32_0 = arith.constant 0 : i32
    %c0_i32_1 = arith.constant 0 : i32
    return %c0_i32, %c0_i32_0 : i32, i32
  }
  func.func @transform_5(%arg0: i32) -> (i32, i32) {
    %c0_i32 = arith.constant 0 : i32
    %c0_i32_0 = arith.constant 0 : i32
    %c0_i32_1 = arith.constant 0 : i32
    return %c0_i32, %c0_i32_0 : i32, i32
  }
  func.func @transform_6(%arg0: i32) -> (i32, i32) {
    %c0_i32 = arith.constant 0 : i32
    %c0_i32_0 = arith.constant 0 : i32
    %c0_i32_1 = arith.constant 0 : i32
    return %c0_i32, %c0_i32_0 : i32, i32
  }
}

</mosaic_0001>

<bundles_post_ra>
// kernel: tpu_custom_call.1
= control target key start
LH: loop header
LB: loop body
LE: loop exit
PB: predicated region body
PF: predicated region fallthrough
CT: control target
= control target key end

     0   :  { %11 = vsyncpa [#allocation4], 0  ;;  %s4295_s0 = inlined_call_operand.hbm [shape: f32[8,8,16], index: 0, kind: input, shape index: {}]   ;;  %s4296_s1 = inlined_call_operand.hbm [shape: f32[16,256], index: 1, kind: input, shape index: {}]   ;;  %s4297_s2 = inlined_call_operand.hbm [shape: f32[128,256], index: 2, kind: input, shape index: {}]   ;;  %s4298_s3 = inlined_call_operand.vmem [shape: f32[1,256], index: 3, kind: input, shape index: {}]   ;;  %s4299_s4 = inlined_call_operand.hbm [shape: f32[128,128], index: 4, kind: input, shape index: {}]   ;;  %s4300_s5 = inlined_call_operand.vmem [shape: f32[1,128], index: 5, kind: input, shape index: {}]   ;;  %s4301_s6 = inlined_call_operand.hbm [shape: f32[8,128], index: 6, kind: output, shape index: {}]  }
   0x1   :  { %13 = vsyncpa [#allocation4 + $0x1], 0 }
   0x2   :  { %14 = vsyncpa [#allocation7], 0 }
   0x3   :  { %15 = vsyncpa [#allocation10], 0 }
   0x4   :  { %16 = vsyncpa [#allocation5], 0  ;;  %s3527_s21 = smov 0   ;;  %s3529_s22 = smov 0  }
   0x5   :  { %s3531_s23 = smov 0   ;;  %s3533_s24 = smov 0  }
   0x6 LB: > { %s3546_s25 = sadd.s32 4294967295, %s3476_s24   ;;  %p42_p0 = scmp.ne.s32.totalorder %s3468_s22, %s3464_s21  ;;  %s3476_s24 = sphi %s3533_s24, %s4392_s24   ;;  %s3472_s23 = sphi %s3531_s23, %s4391_s23   ;;  %s3468_s22 = sphi %s3529_s22, %s4390_s22   ;;  %s3464_s21 = sphi %s3527_s21, %s4389_s21  }
   0x7   : > { %p4302_p1 = scmp.eq.s32.totalorder %s3546_s25, 0  ;;  %p2474_p2 = scmp.ge.s32.totalorder %s3476_s24, 1 }
   0x8   : > { %p179_p3 = scmp.lt.s32.totalorder %s3476_s24, 9  ;;  %s3478_s28 = smov [#allocation6]  }
   0x9   : > { %p3555_p5 = por %p4302_p1, %p42_p0  ;;  %s191_s29 = sshll.u32 %s3478_s28, 4  ;;  %s3563_s29 = int_to_ptr.vmem [resolvable:$true] %s191_s29 }
   0xa   : > { %p3559_p6 = pnand %p2474_p2, %p179_p3  ;;  %s3479_s7 = smov [#allocation8]  }
   0xb   : > { %s4330_s26 = scalar_select %p3555_p5, 1, 0 }
   0xc   : > { %s4331_s27 = scalar_select %p3559_p6, 1, 0 }
   0xd   : > { %p3216_p7 = pneg %p3559_p6  ;;  %s204_s8 = sshll.u32 %s3479_s7, 4  ;;  %s3573_s8 = int_to_ptr.vmem [resolvable:$true] %s204_s8 }
   0xe   : > { %s3480_s9 = smov [#allocation9]   ;;  %s3290_s13 = scalar_lea.hbm %s4296_s1, 512 }
   0xf   : > { %p3569_p8 = pnand %p3216_p7, %p4302_p1  ;;  %s3575_s10 = sshll.u32 %s3480_s9, 4  ;;  %s221_s10 = int_to_ptr.vmem [resolvable:$true] %s3575_s10 }
  0x10   : > { %p3291_p9 = scmp.ne.s32.totalorder %s4296_s1, %s3290_s13  ;;  %p3297_p13 = scmp.lt.u32.totalorder %s3290_s13, %s4296_s1 }
  0x11   : > { %p3585_p10 = pneg %p3569_p8 }
  0x13   : > { %p3293_p11 = pnand %p3585_p10, %p3291_p9 }
  0x15   : > { %p3294_p12 = pneg %p3293_p11 }
  0x17   : > { %p3299_p0 = pnand %p3297_p13, %p3294_p12 }
  0x19   : > { %3302 = shalt.err (!%p3299_p0)
}
  0x1a   : > { %s3303_s19 = scalar_lea.vmem %s3563_s29, 512  ;;  %p3311_p4 = scmp.lt.s32.totalorder %s3563_s29, %s3563_s29 }
  0x1b   : > { %p3304_p2 = scmp.ne.s32.totalorder %s3563_s29, %s3303_s19  ;;  %p3312_p1 = scmp.lt.s32.totalorder %s3303_s19, %s3303_s19 }
  0x1d   : > { %p3306_p3 = pnand %p3304_p2, %p3585_p10  ;;  %p3313_p9 = por %p3312_p1, %p3311_p4 }
  0x1f   : > { %p3307_p7 = pneg %p3306_p3 }
  0x21   : > { %p3314_p11 = pnand %p3313_p9, %p3307_p7 }
  0x23   : > { %3317 = shalt.err (!%p3314_p11)
}
  0x24   : > { %s3481_s20 = smov 256   ;;  %s3482_s21 = smov 16  }
  0x25   : > { %3219 = dma.hbm_to_vmem [thread:$0]  (!%p3569_p8), %s4296_s1, 512, %s3563_s29, [#allocation7], %s3481_s20, %s3481_s20, %s3482_s21  }
  0x26   : > { %s3318_s12 = scalar_lea.hbm %s4297_s2, 4096 }
  0x27   : > { %p3319_p1 = scmp.ne.s32.totalorder %s4297_s2, %s3318_s12  ;;  %p3325_p13 = scmp.lt.u32.totalorder %s3318_s12, %s4297_s2 }
  0x29   : > { %p3321_p4 = pnand %p3319_p1, %p3585_p10 }
  0x2b   : > { %p3322_p12 = pneg %p3321_p4 }
  0x2d   : > { %p3327_p0 = pnand %p3325_p13, %p3322_p12 }
  0x2f   : > { %3330 = shalt.err (!%p3327_p0)
}
  0x30   : > { %s3331_s29 = scalar_lea.vmem %s3573_s8, 4096  ;;  %p3339_p9 = scmp.lt.s32.totalorder %s3573_s8, %s3573_s8 }
  0x31   : > { %p3332_p2 = scmp.ne.s32.totalorder %s3573_s8, %s3331_s29  ;;  %p3340_p11 = scmp.lt.s32.totalorder %s3331_s29, %s3331_s29 }
  0x33   : > { %p3334_p3 = pnand %p3332_p2, %p3585_p10  ;;  %p3341_p1 = por %p3340_p11, %p3339_p9 }
  0x35   : > { %p3335_p7 = pneg %p3334_p3 }
  0x37   : > { %p3342_p4 = pnand %p3341_p1, %p3335_p7 }
  0x39   : > { %3345 = shalt.err (!%p3342_p4)
}
  0x3a   : > { %3222 = dma.hbm_to_vmem [thread:$0]  (!%p3569_p8), %s4297_s2, 4096, %s3573_s8, [#allocation7], %s3481_s20, %s3481_s20, %s3482_s21  }
  0x3b   : > { %s3346_s9 = scalar_lea.hbm %s4299_s4, 2048 }
  0x3c   : > { %p3347_p12 = scmp.ne.s32.totalorder %s4299_s4, %s3346_s9  ;;  %p3353_p2 = scmp.lt.u32.totalorder %s3346_s9, %s4299_s4 }
  0x3e   : > { %p3349_p13 = pnand %p3347_p12, %p3585_p10 }
  0x40   : > { %p3350_p0 = pneg %p3349_p13 }
  0x42   : > { %p3355_p3 = pnand %p3353_p2, %p3350_p0 }
  0x44   : > { %3358 = shalt.err (!%p3355_p3)
}
  0x45   : > { %s3359_s15 = scalar_lea.vmem %s221_s10, 2048  ;;  %p3367_p1 = scmp.lt.s32.totalorder %s221_s10, %s221_s10 }
  0x46   : > { %p3360_p7 = scmp.ne.s32.totalorder %s221_s10, %s3359_s15  ;;  %p3368_p4 = scmp.lt.s32.totalorder %s3359_s15, %s3359_s15 }
  0x48   : > { %p3362_p9 = pnand %p3360_p7, %p3585_p10  ;;  %p3369_p5 = por %p3368_p4, %p3367_p1 }
  0x4a   : > { %p3363_p11 = pneg %p3362_p9 }
  0x4c   : > { %p3370_p6 = pnand %p3369_p5, %p3363_p11 }
  0x4e   : > { %3373 = shalt.err (!%p3370_p6)
}
  0x4f   : > { %s3483_s8 = smov 128   ;;  %s3484_s16 = smov 8  }
  0x50   : > { %3225 = dma.hbm_to_vmem [thread:$0]  (!%p3569_p8), %s4299_s4, 2048, %s221_s10, [#allocation10], %s3483_s8, %s3483_s8, %s3484_s16  }
  0x51   : > { %s3649_s17 = sadd.s32 1, %s3476_s24   ;;  %s29_s18 = sadd.s32 1, %s3472_s23 }
  0x52   : > { %s26_s29 = ssub.s32 %s3476_s24, %s3649_s17  ;;  %p36_p6 = scmp.ne.s32.totalorder %s3472_s23, %s3468_s22 }
  0x53   : > { %p27_p5 = scmp.eq.s32.totalorder %s26_s29, 0  ;;  %p37_p10 = scmp.eq.s32.totalorder %s3476_s24, 0 }
  0x54   : > { %p3233_p12 = scmp.lt.s32.totalorder %s3476_s24, 8  ;;  %s237_s28 = sand.u32 1, %s3472_s23  }
  0x55   : > { %s3659_s19 = scalar_select %p27_p5, %s3472_s23, %s29_s18  }
  0x56   : > { %p38_p13 = por %p37_p10, %p36_p6  ;;  %s2479_s7 = sshll.u32 %s237_s28, 3 }
  0x57   : > { %s2480_s9 = sshll.u32 %s3476_s24, 7  ;;  %s241_s10 = scalar_lea.vmem [#allocation3], %s2479_s7 }
  0x58   : > { %s3666_s12 = scalar_lea.hbm %s4295_s0, %s2480_s9  ;;  %s248_s13 = sshll.u32 %s241_s10, 4  ;;  %s3668_s13 = int_to_ptr.vmem [resolvable:$true] %s248_s13 }
  0x59   : > { %p3670_p8 = pnand %p3233_p12, %p38_p13  ;;  %s238_s24 = scalar_lea.sflag [#allocation4], %s237_s28 }
  0x5a   : > { %s3374_s15 = scalar_lea.hbm %s3666_s12, 128  ;;  %s3379_s20 = scalar_lea.hbm %s4295_s0, 1024 }
  0x5b   : > { %p3375_p0 = scmp.ne.s32.totalorder %s3666_s12, %s3374_s15  ;;  %p3376_p2 = pneg %p3670_p8 }
  0x5c   : > { %p3380_p9 = scmp.lt.u32.totalorder %s3666_s12, %s4295_s0  ;;  %p3381_p11 = scmp.lt.u32.totalorder %s3379_s20, %s3374_s15 }
  0x5d   : > { %p3377_p3 = pnand %p3376_p2, %p3375_p0  ;;  %p3383_p4 = scmp.lt.u32.totalorder %s3374_s15, %s3666_s12 }
  0x5e   : > { %p3382_p1 = por %p3381_p11, %p3380_p9 }
  0x5f   : > { %p3378_p7 = pneg %p3377_p3 }
  0x60   : > { %p3384_p5 = por %p3383_p4, %p3382_p1 }
  0x62   : > { %p3385_p6 = pnand %p3384_p5, %p3378_p7 }
  0x64   : > { %3388 = shalt.err (!%p3385_p6)
}
  0x65   : > { %s3389_s18 = scalar_lea.vmem %s3668_s13, 128  ;;  %s3485_s28 = smov [#allocation3]  }
  0x66   : > { %p3390_p10 = scmp.ne.s32.totalorder %s3668_s13, %s3389_s18  ;;  %s3394_s7 = sshll.u32 %s3485_s28, 4  ;;  %s3395_s7 = int_to_ptr.vmem [resolvable:$false] %s3394_s7 }
  0x67   : > { %s3396_s9 = scalar_lea.vmem %s3395_s7, 256  ;;  %p3397_p0 = scmp.lt.s32.totalorder %s3668_s13, %s3395_s7 }
  0x68   : > { %p3392_p12 = pnand %p3390_p10, %p3376_p2  ;;  %p3398_p3 = scmp.lt.s32.totalorder %s3396_s9, %s3389_s18 }
  0x6a   : > { %p3393_p13 = pneg %p3392_p12  ;;  %p3399_p9 = por %p3398_p3, %p3397_p0 }
  0x6c   : > { %p3400_p11 = pnand %p3399_p9, %p3393_p13 }
  0x6e   : > { %3403 = shalt.err (!%p3400_p11)
}
  0x6f   : > { %3229 = dma.hbm_to_vmem [thread:$0]  (!%p3670_p8), %s3666_s12, 128, %s3668_s13, %s238_s24  }
  0x70   : > { %p4335_p7 = scmp.ne.s32.totalorder %s4331_s27, 0 }
  0x72   : > { %257 = sbr.rel (%p4335_p7) target bundleno = 827 (0x33b), region = 44 }
  0x79   : > { %s259_s30 = sand.u32 1, %s3468_s22   ;;  %p4336_p2 = scmp.ne.s32.totalorder %s4330_s26, 0 }
  0x7a   : > { %s3702_s11 = sshll.u32 %s259_s30, 3  ;;  %s260_s10 = scalar_lea.sflag [#allocation4], %s259_s30 }
  0x7b   : > { %s263_s15 = scalar_lea.vmem [#allocation3], %s3702_s11 }
  0x7c   : > { %3447 = dma.done.wait (%p4336_p2), %s260_s10, 128  }
  0x7d   : > { %3449 = vsyncadd (%p4336_p2), %s260_s10, 4294967168  ;;  %p4337_p1 = scmp.eq.s32.totalorder %s3546_s25, 0 }
  0x7f   : > { %3451 = dma.done.wait (%p4337_p1), [#allocation7], 4608   ;;  %p4338_p8 = pmov %p4337_p1 }
  0x80   : > { %p4339_p4 = pmov %p4337_p1 }
  0x81   : > { %3453 = vsyncadd (%p4338_p8), [#allocation7], 4294962688 }
  0x82   : > { %3455 = dma.done.wait (%p4339_p4), [#allocation10], 2048   ;;  %p4340_p5 = pmov %p4337_p1 }
  0x83   : > { %p4341_p6 = scmp.ne.s32.totalorder %s3546_s25, 0 }
  0x84   : > { %3457 = vsyncadd (%p4340_p5), [#allocation10], 4294965248  ;;  %v3486_v0 = vmov (!%p4341_p6), 0.0  }
  0x85   : > { %302 = sbr.rel (%p4341_p6) target bundleno = 140 (0x8c), region = 64  ;;  %303 = vst [vmem:[#allocation2] sm:$0xff] (!%p4341_p6), %v3486_v0 }
  0x8c PF: > { %v311_v1 = vld [vmem:[#allocation8 + $0x8] sm:$0xff]  ;;  %v313_v2 = vld [vmem:[#allocation8 + $0x18] sm:$0xff]  ;;  %v310_v3 = vld [vmem:[#allocation8] sm:$0xff]  ;;  %v4305_v10 = vmov 0.0   ;;  %vm1197_vm0 = vcmask 130048   ;;  %p2488_p10 = scmp.ne.s32.totalorder %s3546_s25, 7 }
  0x8d   : > { %v342_v4 = vand.u32 4294901760, %v311_v1  ;;  %v346_v5 = vand.u32 4294901760, %v313_v2  ;;  %v312_v6 = vld [vmem:[#allocation8 + $0x10] sm:$0xff]  ;;  %v344_v7 = vand.u32 4294901760, %v310_v3  ;;  %v315_v8 = vld [vmem:[#allocation8 + $0x28] sm:$0xff]  ;;  %v317_v9 = vld [vmem:[#allocation8 + $0x38] sm:$0xff]  ;;  %438 = vmatprep.mubr.f32.mxu1 %v4305_v10  ;;  %915 = vmatprep.mubr.f32.mxu0 %v4305_v10 }
  0x8e   : > { %v348_v11 = vand.u32 4294901760, %v312_v6  ;;  %v350_v12 = vand.u32 4294901760, %v315_v8  ;;  %v354_v13 = vand.u32 4294901760, %v317_v9  ;;  %v314_v14 = vld [vmem:[#allocation8 + $0x20] sm:$0xff]  ;;  %v316_v15 = vld [vmem:[#allocation8 + $0x30] sm:$0xff]  ;;  %v319_v16 = vld [vmem:[#allocation8 + $0x48] sm:$0xff] }
  0x8f   : > { %v3721_v17 = vpack.c.bf16 %v346_v5, %v342_v4  ;;  %v321_v18 = vld [vmem:[#allocation8 + $0x58] sm:$0xff]  ;;  %v318_v19 = vld [vmem:[#allocation8 + $0x40] sm:$0xff]  ;;  %v320_v20 = vld [vmem:[#allocation8 + $0x50] sm:$0xff]  ;;  %v3723_v21 = vsub.f32 %v311_v1, %v342_v4  ;;  %v3730_v26 = vsub.f32 %v313_v2, %v346_v5  ;;  %v352_v27 = vand.u32 4294901760, %v314_v14 }
  0x90   : > { %v3725_v22 = vpack.c.bf16 %v348_v11, %v344_v7  ;;  %v3727_v23 = vpack.c.bf16 %v354_v13, %v350_v12  ;;  %v323_v24 = vld [vmem:[#allocation8 + $0x68] sm:$0xff]  ;;  %v325_v25 = vld [vmem:[#allocation8 + $0x78] sm:$0xff]  ;;  %v356_v28 = vand.u32 4294901760, %v316_v15  ;;  %v358_v29 = vand.u32 4294901760, %v319_v16  ;;  %v322_v38 = vld [vmem:[#allocation8 + $0x60] sm:$0xff] }
  0x91   : > { %2807 = vmatprep.subr.bf16.mxu1 %v3721_v17  ;;  %2903 = vmatprep.subr.bf16.mxu0 %v3721_v17  ;;  %v3734_v30 = vsub.f32 %v310_v3, %v344_v7  ;;  %v362_v31 = vand.u32 4294901760, %v321_v18  ;;  %v360_v32 = vand.u32 4294901760, %v318_v19  ;;  %v364_v33 = vand.u32 4294901760, %v320_v20  ;;  %v324_v39 = vld [vmem:[#allocation8 + $0x70] sm:$0xff]  ;;  %v327_v40 = vld [vmem:[#allocation8 + $0x88] sm:$0xff]  ;;  %v329_v45 = vld [vmem:[#allocation8 + $0x98] sm:$0xff] }
  0x92   : > { %4342 = vst [vmem:[#allocation16_spill] sm:$0xff] %v3725_v22  ;;  %4343 = vst [vmem:[#allocation17_spill] sm:$0xff] %v3727_v23  ;;  %2809 = vmatpush1.bf16.msra.mxu1 %v3725_v22  ;;  %2905 = vmatpush1.bf16.msra.mxu0 %v3725_v22  ;;  %v3737_v34 = vsub.f32 %v312_v6, %v348_v11  ;;  %v3741_v35 = vpack.c.bf16 %v356_v28, %v352_v27  ;;  %v366_v36 = vand.u32 4294901760, %v323_v24  ;;  %v326_v46 = vld [vmem:[#allocation8 + $0x80] sm:$0xff]  ;;  %v328_v47 = vld [vmem:[#allocation8 + $0x90] sm:$0xff]  ;;  %vm3489_vm1 = vmmov (!%p2488_p10), 0  }
  0x93   : > { %2811 = vmatprep.subr.bf16.mxu1 %v3727_v23  ;;  %2907 = vmatprep.subr.bf16.mxu0 %v3727_v23  ;;  %v370_v37 = vand.u32 4294901760, %v325_v25  ;;  %v3743_v41 = vsub.f32 %v315_v8, %v350_v12  ;;  %v3745_v42 = vsub.f32 %v317_v9, %v354_v13  ;;  %v3747_v43 = vsub.f32 %v314_v14, %v352_v27  ;;  %v331_v52 = vld [vmem:[#allocation8 + $0xa8] sm:$0xff]  ;;  %v333_v61 = vld [vmem:[#allocation8 + $0xb8] sm:$0xff]  ;;  %v330_v62 = vld [vmem:[#allocation8 + $0xa0] sm:$0xff] }
  0x94   : > { %4344 = vst [vmem:[#allocation18_spill] sm:$0xff] %v3741_v35  ;;  %v3749_v44 = vpack.c.bf16 %v362_v31, %v358_v29  ;;  %v3751_v48 = vsub.f32 %v316_v15, %v356_v28  ;;  %v3753_v49 = vsub.f32 %v319_v16, %v358_v29  ;;  %v3755_v50 = vsub.f32 %v321_v18, %v362_v31  ;;  %v332_v3 = vld [vmem:[#allocation8 + $0xb0] sm:$0xff]  ;;  %v335_v4 = vld [vmem:[#allocation8 + $0xc8] sm:$0xff]  ;;  %v337_v5 = vld [vmem:[#allocation8 + $0xd8] sm:$0xff] }
  0x95   : > { %4345 = vst [vmem:[#allocation19_spill] sm:$0xff] %v3747_v43  ;;  %v3757_v51 = vpack.c.bf16 %v364_v33, %v360_v32  ;;  %v3761_v53 = vsub.f32 %v318_v19, %v360_v32  ;;  %v368_v54 = vand.u32 4294901760, %v322_v38  ;;  %v372_v55 = vand.u32 4294901760, %v324_v39  ;;  %v334_v11 = vld [vmem:[#allocation8 + $0xc0] sm:$0xff]  ;;  %v336_v16 = vld [vmem:[#allocation8 + $0xd0] sm:$0xff]  ;;  %v339_v31 = vld [vmem:[#allocation8 + $0xe8] sm:$0xff] }
  0x96   : > { %4346 = vst [vmem:[#allocation20_spill] sm:$0xff] %v3749_v44  ;;  %4347 = vst [vmem:[#allocation21_spill] sm:$0xff] %v3751_v48  ;;  %2813 = vmatpush1.bf16.msra.mxu1 %v3741_v35  ;;  %2909 = vmatpush1.bf16.msra.mxu0 %v3741_v35  ;;  %v374_v56 = vand.u32 4294901760, %v327_v40  ;;  %v3765_v57 = vpack.c.bf16 %v370_v37, %v366_v36  ;;  %v378_v58 = vand.u32 4294901760, %v329_v45  ;;  %v376_v59 = vand.u32 4294901760, %v326_v46  ;;  %v341_v32 = vld [vmem:[#allocation8 + $0xf8] sm:$0xff] }
  0x97   : > { %4348 = vst [vmem:[#allocation22_spill] sm:$0xff] %v3757_v51  ;;  %4349 = vst [vmem:[#allocation23_spill] sm:$0xff] %v3761_v53  ;;  %2815 = vmatprep.subr.bf16.mxu1 %v3749_v44  ;;  %2911 = vmatprep.subr.bf16.mxu0 %v3749_v44  ;;  %v380_v60 = vand.u32 4294901760, %v328_v47  ;;  %v3767_v63 = vsub.f32 %v320_v20, %v364_v33  ;;  %v3769_v0 = vsub.f32 %v323_v24, %v366_v36  ;;  %v338_v33 = vld [vmem:[#allocation8 + $0xe0] sm:$0xff] }
  0x98   : > { %4350 = vst [vmem:[#allocation24_spill] sm:$0xff] %v3765_v57  ;;  %v3771_v1 = vsub.f32 %v325_v25, %v370_v37  ;;  %v382_v2 = vand.u32 4294901760, %v331_v52  ;;  %v3773_v6 = vpack.c.bf16 %v372_v55, %v368_v54  ;;  %v3775_v7 = vsub.f32 %v322_v38, %v368_v54 }
  0x99   : > { %4351 = vst [vmem:[#allocation25_spill] sm:$0xff] %v3767_v63  ;;  %v3777_v8 = vsub.f32 %v324_v39, %v372_v55  ;;  %v3779_v9 = vsub.f32 %v327_v40, %v374_v56  ;;  %v3783_v12 = vpack.c.bf16 %v378_v58, %v374_v56  ;;  %v3785_v13 = vsub.f32 %v329_v45, %v378_v58  ;;  %v340_v40 = vld [vmem:[#allocation8 + $0xf0] sm:$0xff]  ;;  %v3803_v45 = vld [vmem:[#allocation2] sm:$0xff] }
  0x9a   : > { %4352 = vst [vmem:[#allocation26_spill] sm:$0xff] %v3773_v6  ;;  %2817 = vmatpush1.bf16.msra.mxu1 %v3757_v51  ;;  %2913 = vmatpush1.bf16.msra.mxu0 %v3757_v51  ;;  %v386_v14 = vand.u32 4294901760, %v333_v61  ;;  %v384_v15 = vand.u32 4294901760, %v330_v62  ;;  %v3789_v18 = vpack.c.bf16 %v380_v60, %v376_v59  ;;  %v388_v19 = vand.u32 4294901760, %v332_v3  ;;  %4357 = vst [vmem:[#allocation31_spill] sm:$0xff] %v3803_v45 }
  0x9b   : > { %4353 = vst [vmem:[#allocation27_spill] sm:$0xff] %v3783_v12  ;;  %2819 = vmatprep.subr.bf16.mxu1 %v3765_v57  ;;  %2915 = vmatprep.subr.bf16.mxu0 %v3765_v57  ;;  %v390_v20 = vand.u32 4294901760, %v335_v4  ;;  %v394_v24 = vand.u32 4294901760, %v337_v5  ;;  %v3791_v25 = vsub.f32 %v326_v46, %v376_v59  ;;  %v3793_v27 = vsub.f32 %v328_v47, %v380_v60 }
  0x9c   : > { %4354 = vst [vmem:[#allocation28_spill] sm:$0xff] %v3789_v18  ;;  %v3795_v28 = vsub.f32 %v331_v52, %v382_v2  ;;  %v392_v29 = vand.u32 4294901760, %v334_v11  ;;  %v3797_v36 = vpack.c.bf16 %v386_v14, %v382_v2  ;;  %v3799_v37 = vsub.f32 %v333_v61, %v386_v14 }
  0x9d   : > { %v3801_v38 = vsub.f32 %v330_v62, %v384_v15  ;;  %v396_v39 = vand.u32 4294901760, %v336_v16  ;;  %v3807_v46 = vpack.c.bf16 %v388_v19, %v384_v15  ;;  %v3809_v47 = vsub.f32 %v332_v3, %v388_v19 }
  0x9e   : > { %4355 = vst [vmem:[#allocation29_spill] sm:$0xff] %v3795_v28  ;;  %4356 = vst [vmem:[#allocation30_spill] sm:$0xff] %v3797_v36  ;;  %2821 = vmatpush1.bf16.msra.mxu1 %v3773_v6  ;;  %2917 = vmatpush1.bf16.msra.mxu0 %v3773_v6  ;;  %v3811_v52 = vpack.c.bf16 %v394_v24, %v390_v20  ;;  %v3815_v54 = vsub.f32 %v335_v4, %v390_v20  ;;  %v398_v55 = vand.u32 4294901760, %v339_v31 }
  0x9f   : > { %4358 = vst [vmem:[#allocation32_spill] sm:$0xff] %v3807_v46  ;;  %2823 = vmatprep.subr.bf16.mxu1 %v3783_v12  ;;  %2919 = vmatprep.subr.bf16.mxu0 %v3783_v12  ;;  %v402_v56 = vand.u32 4294901760, %v341_v32  ;;  %v400_v58 = vand.u32 4294901760, %v338_v33  ;;  %v404_v59 = vand.u32 4294901760, %v340_v40  ;;  %v452_v60 = vand.u32 4294901760, %v3723_v21 }
  0xa0   : > { %4359 = vst [vmem:[#allocation33_spill] sm:$0xff] %v3811_v52  ;;  %4360 = vst [vmem:[#allocation34_spill] sm:$0xff] %v3815_v54  ;;  %v464_v61 = vand.u32 4294901760, %v3730_v26  ;;  %v3820_v62 = vand.u32 4294901760, %v3803_v45  ;;  %v3822_v2 = vsub.f32 %v337_v5, %v394_v24  ;;  %v3824_v3 = vpack.c.bf16 %v396_v39, %v392_v29 }
  0xa1   : > { %v3826_v14 = vsub.f32 %v334_v11, %v392_v29  ;;  %v3828_v15 = vsub.f32 %v336_v16, %v396_v39  ;;  %v3832_v4 = vsub.f32 %v339_v31, %v398_v55  ;;  %v453_v19 = vsub.f32 %v3723_v21, %v452_v60 }
  0xa2   : > { %4361 = vst [vmem:[#allocation35_spill] sm:$0xff] %v3824_v3  ;;  %2825 = vmatpush1.bf16.msra.mxu1 %v3789_v18  ;;  %2921 = vmatpush1.bf16.msra.mxu0 %v3789_v18  ;;  %v465_v20 = vsub.f32 %v3730_v26, %v464_v61  ;;  %v458_v10 = vand.u32 4294901760, %v3734_v30  ;;  %v3839_v5 = vpack.c.bf16 %v402_v56, %v398_v55  ;;  %v470_v16 = vand.u32 4294901760, %v3737_v34 }
  0xa3   : > { %2827 = vmatprep.subr.bf16.mxu1 %v3797_v36  ;;  %2923 = vmatprep.subr.bf16.mxu0 %v3797_v36  ;;  %v3843_v11 = vsub.f32 %v3803_v45, %v3820_v62  ;;  %v476_v24 = vand.u32 4294901760, %v3743_v41  ;;  %v3847_v29 = vsub.f32 %v341_v32, %v402_v56  ;;  %v3849_v31 = vpack.c.bf16 %v404_v59, %v400_v58 }
  0xa4   : > { %4362 = vst [vmem:[#allocation36_spill] sm:$0xff] %v3839_v5  ;;  %v459_v39 = vsub.f32 %v3734_v30, %v458_v10  ;;  %v488_v18 = vand.u32 4294901760, %v3745_v42  ;;  %v3853_v12 = vsub.f32 %v338_v33, %v400_v58  ;;  %v471_v36 = vsub.f32 %v3737_v34, %v470_v16 }
  0xa5   : > { %4363 = vst [vmem:[#allocation37_spill] sm:$0xff] %v3843_v11  ;;  %4364 = vst [vmem:[#allocation38_spill] sm:$0xff] %v3849_v31  ;;  %v441_v55 = vand.u32 4294901760, %v3843_v11  ;;  %v477_v45 = vsub.f32 %v3743_v41, %v476_v24  ;;  %v3860_v32 = vsub.f32 %v340_v40, %v404_v59  ;;  %v454_v56 = vand.u32 4294901760, %v453_v19 }
  0xa6   : > { %2829 = vmatpush1.bf16.msra.mxu1 %v3807_v46  ;;  %2925 = vmatpush1.bf16.msra.mxu0 %v3807_v46  ;;  %v466_v6 = vand.u32 4294901760, %v465_v20  ;;  %v489_v57 = vsub.f32 %v3745_v42, %v488_v18  ;;  %v2934_v33 = vpack.c.bf16 %v464_v61, %v452_v60  ;;  %v460_v51 = vand.u32 4294901760, %v459_v39 }
  0xa7   : > { %2831 = vmatprep.subr.bf16.mxu1 %v3811_v52  ;;  %2927 = vmatprep.subr.bf16.mxu0 %v3811_v52  ;;  %v442_v58 = vsub.f32 %v3843_v11, %v441_v55  ;;  %v482_v44 = vand.u32 4294901760, %v3747_v43  ;;  %v472_v35 = vand.u32 4294901760, %v471_v36  ;;  %v494_v23 = vand.u32 4294901760, %v3751_v48 }
  0xa8   : > { %v500_v40 = vand.u32 4294901760, %v3753_v49  ;;  %v512_v59 = vand.u32 4294901760, %v3755_v50  ;;  %v2936_v19 = vpack.c.bf16 %v470_v16, %v458_v10  ;;  %v478_v20 = vand.u32 4294901760, %v477_v45 }
  0xa9   : > { %v490_v46 = vand.u32 4294901760, %v489_v57  ;;  %v506_v22 = vand.u32 4294901760, %v3761_v53  ;;  %v2838_v60 = vpack.c.bf16 %v466_v6, %v454_v56  ;;  %v483_v61 = vsub.f32 %v3747_v43, %v482_v44 }
  0xaa   : > { %2833 = vmatpush1.bf16.msra.mxu1 %v3824_v3  ;;  %2929 = vmatpush1.bf16.msra.mxu0 %v3824_v3  ;;  %v495_v36 = vsub.f32 %v3751_v48, %v494_v23  ;;  %v518_v39 = vand.u32 4294901760, %v3767_v63  ;;  %v2938_v10 = vpack.c.bf16 %v488_v18, %v476_v24  ;;  %v501_v57 = vsub.f32 %v3753_v49, %v500_v40 }
  0xab   : > { %2835 = vmatprep.subr.bf16.mxu1 %v3839_v5  ;;  %2931 = vmatprep.subr.bf16.mxu0 %v3839_v5  ;;  %v513_v45 = vsub.f32 %v3755_v50, %v512_v59  ;;  %v443_v16 = vand.u32 4294901760, %v442_v58  ;;  %v2840_v11 = vpack.c.bf16 %v472_v35, %v460_v51  ;;  %v507_v3 = vsub.f32 %v3761_v53, %v506_v22 }
  0xac   : > { %v519_v6 = vsub.f32 %v3767_v63, %v518_v39  ;;  %v2842_v56 = vpack.c.bf16 %v490_v46, %v478_v20  ;;  %v2940_v52 = vpack.c.bf16 %v494_v23, %v482_v44  ;;  %v524_v48 = vand.u32 4294901760, %v3769_v0 }
  0xad   : > { %v536_v43 = vand.u32 4294901760, %v3771_v1  ;;  %v484_v18 = vand.u32 4294901760, %v483_v61  ;;  %v496_v24 = vand.u32 4294901760, %v495_v36  ;;  %v502_v5 = vand.u32 4294901760, %v501_v57 }
  0xae   : > { %2837 = vmatpush1.bf16.msra.mxu1 %v3849_v31  ;;  %2933 = vmatpush1.bf16.msra.mxu0 %v3849_v31  ;;  %v530_v58 = vand.u32 4294901760, %v3775_v7  ;;  %v514_v35 = vand.u32 4294901760, %v513_v45  ;;  %v525_v51 = vsub.f32 %v3769_v0, %v524_v48  ;;  %v542_v44 = vand.u32 4294901760, %v3777_v8 }
  0xaf   : > { %2839 = vmatprep.subr.bf16.mxu1 %v2838_v60  ;;  %2935 = vmatprep.subr.bf16.mxu0 %v2934_v33  ;;  %v537_v23 = vsub.f32 %v3771_v1, %v536_v43  ;;  %v2942_v46 = vpack.c.bf16 %v512_v59, %v500_v40  ;;  %v508_v20 = vand.u32 4294901760, %v507_v3  ;;  %v520_v63 = vand.u32 4294901760, %v519_v6 }
  0xb0   : > { %v548_v53 = vand.u32 4294901760, %v3779_v9  ;;  %v2944_v61 = vpack.c.bf16 %v518_v39, %v506_v22  ;;  %v526_v36 = vand.u32 4294901760, %v525_v51  ;;  %v531_v60 = vsub.f32 %v3775_v7, %v530_v58 }
  0xb1   : > { %444 = vmatmul.mubr.f32.vlgmr.msra.gmra.mrb[0].mxu1 %v443_v16  ;;  %919 = vmatmul.mubr.f32.vlgmr.msra.gmra.mrb[0].mxu0 %v441_v55  ;;  %v538_v57 = vand.u32 4294901760, %v537_v23  ;;  %v2844_v33 = vpack.c.bf16 %v496_v24, %v484_v18  ;;  %v543_v45 = vsub.f32 %v3777_v8, %v542_v44  ;;  %v560_v31 = vand.u32 4294901760, %v3785_v13 }
  0xb2   : > { %2841 = vmatpush1.bf16.msra.mxu1 %v2840_v11  ;;  %2937 = vmatpush1.bf16.msra.mxu0 %v2936_v19  ;;  %v554_v40 = vand.u32 4294901760, %v3791_v25  ;;  %v2846_v3 = vpack.c.bf16 %v514_v35, %v502_v5  ;;  %v549_v59 = vsub.f32 %v3779_v9, %v548_v53  ;;  %v566_v22 = vand.u32 4294901760, %v3793_v27 }
  0xb3   : > { %2843 = vmatprep.subr.bf16.mxu1 %v2842_v56  ;;  %2939 = vmatprep.subr.bf16.mxu0 %v2938_v10  ;;  %v572_v55 = vand.u32 4294901760, %v3795_v28  ;;  %v2848_v39 = vpack.c.bf16 %v520_v63, %v508_v20  ;;  %v561_v11 = vsub.f32 %v3785_v13, %v560_v31  ;;  %v4365_v16 = vmov 0.0  }
  0xb4   : > { %v555_v19 = vsub.f32 %v3791_v25, %v554_v40  ;;  %674 = vmatprep.mubr.f32.mxu1 %v4365_v16  ;;  %1085 = vmatprep.mubr.f32.mxu0 %v4365_v16  ;;  %v2850_v6 = vpack.c.bf16 %v538_v57, %v526_v36  ;;  %v2946_v18 = vpack.c.bf16 %v536_v43, %v524_v48  ;;  %v532_v56 = vand.u32 4294901760, %v531_v60 }
  0xb5   : > { %v567_v5 = vsub.f32 %v3793_v27, %v566_v22  ;;  %v544_v10 = vand.u32 4294901760, %v543_v45  ;;  %v573_v24 = vsub.f32 %v3795_v28, %v572_v55  ;;  %v584_v63 = vand.u32 4294901760, %v3799_v37 }
  0xb6   : > { %2845 = vmatpush1.bf16.msra.mxu1 %v2844_v33  ;;  %2941 = vmatpush1.bf16.msra.mxu0 %v2940_v52  ;;  %v578_v35 = vand.u32 4294901760, %v3801_v38  ;;  %v550_v51 = vand.u32 4294901760, %v549_v59  ;;  %v562_v23 = vand.u32 4294901760, %v561_v11  ;;  %v590_v20 = vand.u32 4294901760, %v3809_v47 }
  0xb7   : > { %2847 = vmatprep.subr.bf16.mxu1 %v2846_v3  ;;  %2943 = vmatprep.subr.bf16.mxu0 %v2942_v46  ;;  %v596_v43 = vand.u32 4294901760, %v3815_v54  ;;  %v2948_v48 = vpack.c.bf16 %v542_v44, %v530_v58  ;;  %v2950_v36 = vpack.c.bf16 %v560_v31, %v548_v53  ;;  %v556_v57 = vand.u32 4294901760, %v555_v19 }
  0xb8   : > { %v585_v52 = vsub.f32 %v3799_v37, %v584_v63  ;;  %v568_v60 = vand.u32 4294901760, %v567_v5  ;;  %v579_v33 = vsub.f32 %v3801_v38, %v578_v35  ;;  %v591_v45 = vsub.f32 %v3809_v47, %v590_v20 }
  0xb9   : > { %v597_v28 = vsub.f32 %v3815_v54, %v596_v43  ;;  %v2852_v46 = vpack.c.bf16 %v544_v10, %v532_v56  ;;  %v574_v3 = vand.u32 4294901760, %v573_v24  ;;  %v608_v59 = vand.u32 4294901760, %v3822_v2 }
  0xba   : > { %2849 = vmatpush1.bf16.msra.mxu1 %v2848_v39  ;;  %2945 = vmatpush1.bf16.msra.mxu0 %v2944_v61  ;;  %v602_v11 = vand.u32 4294901760, %v3826_v14  ;;  %v2854_v53 = vpack.c.bf16 %v562_v23, %v550_v51  ;;  %v586_v31 = vand.u32 4294901760, %v585_v52  ;;  %v614_v58 = vand.u32 4294901760, %v3828_v15 }
  0xbb   : > { %2851 = vmatprep.subr.bf16.mxu1 %v2850_v6  ;;  %2947 = vmatprep.subr.bf16.mxu0 %v2946_v18  ;;  %v620_v44 = vand.u32 4294901760, %v3832_v4  ;;  %v2952_v19 = vpack.c.bf16 %v566_v22, %v554_v40  ;;  %v2954_v5 = vpack.c.bf16 %v584_v63, %v572_v55  ;;  %v609_v54 = vsub.f32 %v3822_v2, %v608_v59 }
  0xbc   : > { %v2856_v39 = vpack.c.bf16 %v568_v60, %v556_v57  ;;  %v580_v61 = vand.u32 4294901760, %v579_v33  ;;  %v592_v56 = vand.u32 4294901760, %v591_v45  ;;  %v598_v10 = vand.u32 4294901760, %v597_v28 }
  0xbd   : > { %v603_v24 = vsub.f32 %v3826_v14, %v602_v11  ;;  %v615_v6 = vsub.f32 %v3828_v15, %v614_v58  ;;  %v632_v18 = vand.u32 4294901760, %v3847_v29  ;;  %v626_v51 = vand.u32 4294901760, %v3853_v12 }
  0xbe   : > { %2853 = vmatpush1.bf16.msra.mxu1 %v2852_v46  ;;  %2949 = vmatpush1.bf16.msra.mxu0 %v2948_v48  ;;  %v2858_v40 = vpack.c.bf16 %v586_v31, %v574_v3  ;;  %v610_v22 = vand.u32 4294901760, %v609_v54  ;;  %v621_v55 = vsub.f32 %v3832_v4, %v620_v44  ;;  %v638_v63 = vand.u32 4294901760, %v3860_v32 }
  0xbf   : > { %2855 = vmatprep.subr.bf16.mxu1 %v2854_v53  ;;  %2951 = vmatprep.subr.bf16.mxu0 %v2950_v36  ;;  %v633_v28 = vsub.f32 %v3847_v29, %v632_v18  ;;  %v2860_v23 = vpack.c.bf16 %v592_v56, %v580_v61  ;;  %v2956_v48 = vpack.c.bf16 %v590_v20, %v578_v35  ;;  %v604_v57 = vand.u32 4294901760, %v603_v24  ;;  %v4373_v56 = vld [vmem:[#allocation20_spill] sm:$0xff] }
  0xc0   : > { %v616_v52 = vand.u32 4294901760, %v615_v6  ;;  %v627_v60 = vsub.f32 %v3853_v12, %v626_v51  ;;  %v639_v33 = vsub.f32 %v3860_v32, %v638_v63  ;;  %v2862_v36 = vpack.c.bf16 %v610_v22, %v598_v10  ;;  %v307_v24 = vld [vmem:[#allocation6 + $0x8] sm:$0xff]  ;;  %v309_v6 = vld [vmem:[#allocation6 + $0x18] sm:$0xff]  ;;  %v308_v22 = vld [vmem:[#allocation6 + $0x10] sm:$0xff] }
  0xc1   : > { %v2958_v54 = vpack.c.bf16 %v608_v59, %v596_v43  ;;  %v622_v45 = vand.u32 4294901760, %v621_v55  ;;  %v634_v46 = vand.u32 4294901760, %v633_v28  ;;  %v2960_v53 = vpack.c.bf16 %v614_v58, %v602_v11  ;;  %v4366_v58 = vld [vmem:[#allocation16_spill] sm:$0xff]  ;;  %v304_v55 = vld [vmem:[%s263_s15] sm:$0xff] }
  0xc2   : > { %2857 = vmatpush1.bf16.msra.mxu1 %v2856_v39  ;;  %2953 = vmatpush1.bf16.msra.mxu0 %v2952_v19  ;;  %v2864_v3 = vpack.c.bf16 %v616_v52, %v604_v57  ;;  %v628_v31 = vand.u32 4294901760, %v627_v60  ;;  %v640_v35 = vand.u32 4294901760, %v639_v33  ;;  %v2962_v19 = vpack.c.bf16 %v632_v18, %v620_v44  ;;  %v4367_v44 = vld [vmem:[#allocation19_spill] sm:$0xff]  ;;  %v4375_v18 = vld [vmem:[#allocation24_spill] sm:$0xff] }
  0xc3   : > { %2859 = vmatprep.subr.bf16.mxu1 %v2858_v40  ;;  %2955 = vmatprep.subr.bf16.mxu0 %v2954_v5  ;;  %v2866_v20 = vpack.c.bf16 %v634_v46, %v622_v45  ;;  %v2964_v61 = vpack.c.bf16 %v638_v63, %v626_v51  ;;  %v2870_v43 = vpack.c.bf16 %v3730_v26, %v3723_v21  ;;  %v4368_v21 = vld [vmem:[#allocation21_spill] sm:$0xff]  ;;  %v306_v40 = vld [vmem:[#allocation6] sm:$0xff]  ;;  %v4376_v63 = vld [vmem:[#allocation26_spill] sm:$0xff] }
  0xc4   : > { %v2868_v39 = vpack.c.bf16 %v640_v35, %v628_v31  ;;  %v2872_v59 = vpack.c.bf16 %v3737_v34, %v3734_v30  ;;  %v2874_v11 = vpack.c.bf16 %v3745_v42, %v3743_v41  ;;  %v2876_v26 = vpack.c.bf16 %v4368_v21, %v4367_v44  ;;  %v4369_v5 = vld [vmem:[#allocation17_spill] sm:$0xff]  ;;  %v4371_v34 = vld [vmem:[#allocation23_spill] sm:$0xff]  ;;  %v4379_v33 = vld [vmem:[#allocation28_spill] sm:$0xff] }
  0xc5   : > { %v2878_v30 = vpack.c.bf16 %v3755_v50, %v3753_v49  ;;  %v4372_v41 = vld [vmem:[#allocation25_spill] sm:$0xff]  ;;  %v2882_v10 = vpack.c.bf16 %v3771_v1, %v3769_v0  ;;  %v4374_v49 = vld [vmem:[#allocation22_spill] sm:$0xff]  ;;  %v2884_v50 = vpack.c.bf16 %v3777_v8, %v3775_v7  ;;  %v2886_v51 = vpack.c.bf16 %v3785_v13, %v3779_v9  ;;  %v4382_v31 = vld [vmem:[#allocation32_spill] sm:$0xff] }
  0xc6   : > { %2861 = vmatpush1.bf16.msra.mxu1 %v2860_v23  ;;  %2957 = vmatpush1.bf16.msra.mxu0 %v2956_v48  ;;  %v2880_v42 = vpack.c.bf16 %v4372_v41, %v4371_v34  ;;  %v1201_v0 = vand.u32 4294901760, %v307_v24  ;;  %v1205_v1 = vand.u32 4294901760, %v309_v6  ;;  %v2888_v28 = vpack.c.bf16 %v3793_v27, %v3791_v25  ;;  %v4377_v48 = vld [vmem:[#allocation27_spill] sm:$0xff]  ;;  %v4378_v9 = vld [vmem:[#allocation29_spill] sm:$0xff]  ;;  %v4381_v45 = vld [vmem:[#allocation34_spill] sm:$0xff] }
  0xc7   : > { %2863 = vmatprep.subr.bf16.mxu1 %v2862_v36  ;;  %2959 = vmatprep.subr.bf16.mxu0 %v2958_v54  ;;  %v1203_v7 = vand.u32 4294901760, %v306_v40  ;;  %v1207_v8 = vand.u32 4294901760, %v308_v22  ;;  %v1199_v23 = vsel %vm1197_vm0, %v304_v55, 0  ;;  %v2890_v13 = vpack.c.bf16 %v3799_v37, %v4378_v9  ;;  %v4380_v54 = vld [vmem:[#allocation30_spill] sm:$0xff]  ;;  %v1692_v55 = vld [vmem:[%s4298_s3] sm:$0x3] }
  0xc8   : > { %v3963_v57 = vsub.f32 %v307_v24, %v1201_v0  ;;  %v1294_v52 = vsub.f32 %v309_v6, %v1205_v1  ;;  %v3965_v60 = vand.u32 4294901760, %v1199_v23  ;;  %v2892_v25 = vpack.c.bf16 %v3809_v47, %v3801_v38 }
  0xc9   : > { %v1288_v27 = vsub.f32 %v306_v40, %v1203_v7  ;;  %v1300_v36 = vsub.f32 %v308_v22, %v1207_v8  ;;  %v2894_v46 = vpack.c.bf16 %v3822_v2, %v4381_v45  ;;  %v2896_v35 = vpack.c.bf16 %v3828_v15, %v3826_v14  ;;  %v4385_v15 = vld [vmem:[#allocation36_spill] sm:$0xff]  ;;  %v4388_v45 = vld [vmem:[#allocation31_spill] sm:$0xff] }
  0xca   : > { %2865 = vmatpush1.bf16.msra.mxu1 %v2864_v3  ;;  %2961 = vmatpush1.bf16.msra.mxu0 %v2960_v53  ;;  %v1283_v37 = vand.u32 4294901760, %v3963_v57  ;;  %v1295_v3 = vand.u32 4294901760, %v1294_v52  ;;  %v1271_v53 = vsub.f32 %v1199_v23, %v3965_v60 }
  0xcb   : > { %2867 = vmatprep.subr.bf16.mxu1 %v2866_v20  ;;  %2963 = vmatprep.subr.bf16.mxu0 %v2962_v19  ;;  %v1289_v38 = vand.u32 4294901760, %v1288_v27  ;;  %v1301_v47 = vand.u32 4294901760, %v1300_v36  ;;  %v4383_v20 = vld [vmem:[#allocation33_spill] sm:$0xff]  ;;  %v2898_v19 = vpack.c.bf16 %v3847_v29, %v3832_v4  ;;  %v4386_v4 = vld [vmem:[#allocation38_spill] sm:$0xff]  ;;  %v3000_v29 = vpack.c.bf16 %v1207_v8, %v1203_v7 }
  0xcc   : > { %v1284_v2 = vsub.f32 %v3963_v57, %v1283_v37  ;;  %v3014_v34 = vpack.c.bf16 %v1295_v3, %v1283_v37 }
  0xcd   : > { %v1302_v14 = vsub.f32 %v1300_v36, %v1301_v47 }
  0xce   : > { %2869 = vmatpush1.bf16.msra.mxu1 %v2868_v39  ;;  %2965 = vmatpush1.bf16.msra.mxu0 %v2964_v61  ;;  %v1296_v39 = vsub.f32 %v1294_v52, %v1295_v3  ;;  %v1272_v61 = vand.u32 4294901760, %v1271_v53  ;;  %v1285_v44 = vand.u32 4294901760, %v1284_v2 }
  0xcf   : > { %2871 = vmatprep.subr.bf16.mxu1 %v2870_v43  ;;  %2967 = vmatprep.subr.bf16.mxu0 %v3721_v17  ;;  %v4370_v17 = vld [vmem:[#allocation18_spill] sm:$0xff]  ;;  %v4384_v43 = vld [vmem:[#allocation35_spill] sm:$0xff] }
  0xd0   : > { %v1297_v21 = vand.u32 4294901760, %v1296_v39 }
  0xd1   : > { %676 = vmatmul.mubr.f32.vlgmr.msra.gmra.mrb[0].mxu1 %v3820_v62  ;;  %1087 = vmatmul.mubr.f32.vlgmr.msra.gmra.mrb[0].mxu0 %v3820_v62 }
  0xd2   : > { %2873 = vmatpush1.bf16.msra.mxu1 %v2872_v59  ;;  %2969 = vmatpush1.bf16.msra.mxu0 %v4366_v58  ;;  %v2900_v59 = vpack.c.bf16 %v3860_v32, %v3853_v12  ;;  %v2998_v58 = vpack.c.bf16 %v1205_v1, %v1201_v0  ;;  %v4387_v12 = vld [vmem:[#allocation37_spill] sm:$0xff] }
  0xd3   : > { %2875 = vmatprep.subr.bf16.mxu1 %v2874_v11  ;;  %2971 = vmatprep.subr.bf16.mxu0 %v4369_v5  ;;  %v1290_v11 = vsub.f32 %v1288_v27, %v1289_v38 }
  0xd4   : > { %810 = vmatprep.mubr.f32.mxu1 %v4365_v16  ;;  %1189 = vmatprep.mubr.f32.mxu0 %v4365_v16 }
  0xd5   : > { %v1291_v5 = vand.u32 4294901760, %v1290_v11 }
  0xd6   : > { %2877 = vmatpush1.bf16.msra.mxu1 %v2876_v26  ;;  %2973 = vmatpush1.bf16.msra.mxu0 %v4370_v17  ;;  %v1273_v26 = vsub.f32 %v1271_v53, %v1272_v61  ;;  %v3002_v17 = vpack.c.bf16 %v1297_v21, %v1285_v44  ;;  %v1728_v44 = vld [vmem:[#allocation9 + $0x30] sm:$0xff] (!%p2488_p10)  ;;  %v1729_v21 = vld [vmem:[#allocation9 + $0x38] sm:$0xff] (!%p2488_p10) }
  0xd7   : > { %2879 = vmatprep.subr.bf16.mxu1 %v2878_v30  ;;  %2975 = vmatprep.subr.bf16.mxu0 %v4373_v56  ;;  %v1303_v30 = vand.u32 4294901760, %v1302_v14  ;;  %v3006_v56 = vpack.c.bf16 %v1294_v52, %v3963_v57 }
  0xd8   : > { %v1274_v32 = vand.u32 4294901760, %v1273_v26 }
  0xd9   : > { %v3004_v41 = vpack.c.bf16 %v1303_v30, %v1291_v5  ;;  %v4027_v5 = vld [vmem:[#allocation9 + $0x40] sm:$0xff] (!%p2488_p10)  ;;  %v4029_v30 = vld [vmem:[#allocation9 + $0x48] sm:$0xff] (!%p2488_p10) }
  0xda   : > { %2881 = vmatpush1.bf16.msra.mxu1 %v2880_v42  ;;  %2977 = vmatpush1.bf16.msra.mxu0 %v4374_v49  ;;  %v3016_v42 = vpack.c.bf16 %v1301_v47, %v1289_v38  ;;  %v3488_v38 = vmov (!%p2488_p10), 0.0|0.0  }
  0xdb   : > { %2883 = vmatprep.subr.bf16.mxu1 %v2882_v10  ;;  %2979 = vmatprep.subr.bf16.mxu0 %v4375_v18 }
  0xde   : > { %2885 = vmatpush1.bf16.msra.mxu1 %v2884_v50  ;;  %2981 = vmatpush1.bf16.msra.mxu0 %v4376_v63 }
  0xdf   : > { %2887 = vmatprep.subr.bf16.mxu1 %v2886_v51  ;;  %2983 = vmatprep.subr.bf16.mxu0 %v4377_v48  ;;  %v1694_v51 = vlaneseq }
  0xe1   : > { %v1695_v40 = vshrl.u32 %v1694_v51, 7 }
  0xe2   : > { %2889 = vmatpush1.bf16.msra.mxu1 %v2888_v28  ;;  %2985 = vmatpush1.bf16.msra.mxu0 %v4379_v33 }
  0xe3   : > { %2891 = vmatprep.subr.bf16.mxu1 %v2890_v13  ;;  %2987 = vmatprep.subr.bf16.mxu0 %v4380_v54  ;;  %v1696_v22 = vsub.s32 0, %v1695_v40  ;;  %v1700_v57 = vsub.s32 1, %v1695_v40 }
  0xe5   : > { %v1701_v52 = vrot.slane %v1692_v55, %v1700_v57 }
  0xe6   : > { %2893 = vmatpush1.bf16.msra.mxu1 %v2892_v25  ;;  %2989 = vmatpush1.bf16.msra.mxu0 %v4382_v31  ;;  %v1723_v31 = vld [vmem:[#allocation9 + $0x8] sm:$0xff] (!%p2488_p10) }
  0xe7   : > { %2895 = vmatprep.subr.bf16.mxu1 %v2894_v46  ;;  %2991 = vmatprep.subr.bf16.mxu0 %v4383_v20  ;;  %v1749_v20 = vand.u32 (!%p2488_p10), 4294901760, %v1723_v31 }
  0xea   : > { %2897 = vmatpush1.bf16.msra.mxu1 %v2896_v35  ;;  %2993 = vmatpush1.bf16.msra.mxu0 %v4384_v43  ;;  %v1724_v35 = vld [vmem:[#allocation9 + $0x10] sm:$0xff] (!%p2488_p10)  ;;  %v1727_v43 = vld [vmem:[#allocation9 + $0x28] sm:$0xff] (!%p2488_p10) }
  0xeb   : > { %2899 = vmatprep.subr.bf16.mxu1 %v2898_v19  ;;  %2995 = vmatprep.subr.bf16.mxu0 %v4385_v15  ;;  %v1725_v19 = vld [vmem:[#allocation9 + $0x18] sm:$0xff] (!%p2488_p10)  ;;  %v1752_v2 = vand.u32 (!%p2488_p10), 4294901760, %v1724_v35 }
  0xec   : > { %v1755_v39 = vand.u32 (!%p2488_p10), 4294901760, %v1725_v19 }
  0xee   : > { %2901 = vmatpush1.bf16.msra.mxu1 %v2900_v59  ;;  %2997 = vmatpush1.bf16.msra.mxu0 %v4386_v4  ;;  %v3490_v59 = vmov (!%p2488_p10), 0.0   ;;  %v4017_v14 = vpack.c.bf16 (!%p2488_p10), %v1755_v39, %v1752_v2  ;;  %v1764_v4 = vand.u32 (!%p2488_p10), 4294901760, %v1728_v44  ;;  %v4064_v51 = vsub.f32 (!%p2488_p10), %v1725_v19, %v1755_v39 }
  0xef   : > { %2999 = vmatprep.subr.bf16.mxu1 %v2998_v58  ;;  %3011 = vmatprep.subr.bf16.mxu0 %v2998_v58 }
  0xf1   : > { %813 = vmatmul.mubr.f32.vlgmr.msra.gmra.mrb[0].mxu1 %v4387_v12  ;;  %1191 = vmatmul.mubr.f32.vlgmr.msra.gmra.mrb[0].mxu0 %v3820_v62  ;;  %v3008_v62 = vpack.c.bf16 %v1300_v36, %v1288_v27  ;;  %v1773_v12 = vand.u32 (!%p2488_p10), 4294901760, %v4029_v30 }
  0xf2   : > { %3001 = vmatpush1.bf16.msra.mxu1 %v3000_v29  ;;  %3013 = vmatpush1.bf16.msra.mxu0 %v3000_v29 }
  0xf3   : > { %1269 = vmatprep.mubr.f32.mxu1 %v4365_v16  ;;  %1522 = vmatprep.mubr.f32.mxu0 %v4365_v16 }
  0xf4   : > { %3003 = vmatprep.subr.bf16.mxu1 %v3002_v17  ;;  %3015 = vmatprep.subr.bf16.mxu0 %v3014_v34  ;;  %v1770_v34 = vand.u32 (!%p2488_p10), 4294901760, %v4027_v5 }
  0xf5   : > { %1275 = vmatmul.mubr.f32.vlgmr.msra.gmra.mrb[2].mxu1 %v1274_v32  ;;  %1526 = vmatmul.mubr.f32.vlgmr.msra.gmra.mrb[2].mxu0 %v1272_v61  ;;  %v1726_v61 = vld [vmem:[#allocation9 + $0x20] sm:$0xff] (!%p2488_p10)  ;;  %v4039_v32 = vld [vmem:[#allocation9 + $0x50] sm:$0xff] (!%p2488_p10) }
  0xf6   : > { %3005 = vmatpush1.bf16.msra.mxu1 %v3004_v41  ;;  %3017 = vmatpush1.bf16.msra.mxu0 %v3016_v42  ;;  %v1758_v15 = vand.u32 (!%p2488_p10), 4294901760, %v1726_v61  ;;  %v4041_v41 = vld [vmem:[#allocation9 + $0x58] sm:$0xff] (!%p2488_p10) }
  0xf7   : > { %1365 = vmatprep.mubr.f32.mxu1 %v4365_v16  ;;  %1608 = vmatprep.mubr.f32.mxu0 %v4365_v16 }
  0xf8   : > { %3007 = vmatprep.subr.bf16.mxu1 %v3006_v56  ;;  %3019 = vmatprep.subr.bf16.mxu0 %v2998_v58  ;;  %v1761_v58 = vand.u32 (!%p2488_p10), 4294901760, %v1727_v43 }
  0xfa   : > { %v4023_v26 = vpack.c.bf16 (!%p2488_p10), %v1761_v58, %v1758_v15 }
  0xfd   : > { %1367 = vmatmul.mubr.f32.vlgmr.msra.gmra.mrb[2].mxu1 %v3965_v60  ;;  %1610 = vmatmul.mubr.f32.vlgmr.msra.gmra.mrb[2].mxu0 %v3965_v60 }
  0xfe   : > { %3009 = vmatpush1.bf16.msra.mxu1 %v3008_v62  ;;  %3021 = vmatpush1.bf16.msra.mxu0 %v3000_v29  ;;  %v1767_v29 = vand.u32 (!%p2488_p10), 4294901760, %v1729_v21  ;;  %v4048_v62 = vsub.f32 (!%p2488_p10), %v1723_v31, %v1749_v20 }
  0xff   : > { %1445 = vmatprep.mubr.f32.mxu1 %v4365_v16  ;;  %1684 = vmatprep.mubr.f32.mxu0 %v4365_v16  ;;  %v1697_v16 = vrot.slane %v1692_v55, %v1696_v22 }
 0x100   : > { %3022 = vmatprep.subr.bf16.mxu1 (!%p2488_p10), %v3488_v38  ;;  %3094 = vmatprep.subr.bf16.mxu0 (!%p2488_p10), %v3488_v38  ;;  %v4033_v17 = vpack.c.bf16 (!%p2488_p10), %v1767_v29, %v1764_v4 }
 0x105   : > { %1448 = vmatmul.mubr.f32.vlgmr.msra.gmra.mrb[2].mxu1 %v1271_v53  ;;  %1686 = vmatmul.mubr.f32.vlgmr.msra.gmra.mrb[2].mxu0 %v3965_v60  ;;  %v1722_v53 = vld [vmem:[#allocation9] sm:$0xff] (!%p2488_p10) }
 0x106   : > { %v1746_v47 = vand.u32 (!%p2488_p10), 4294901760, %v1722_v53  ;;  %2628 = vmatprep.mubr.msk.f32.mxu1 (!%p2488_p10), %vm3489_vm1, %v3490_v59  ;;  %2733 = vmatprep.mubr.msk.f32.mxu0 (!%p2488_p10), %vm3489_vm1, %v3490_v59 }
 0x108   : > { %v4013_v11 = vpack.c.bf16 (!%p2488_p10), %v1749_v20, %v1746_v47  ;;  %v4043_v42 = vsub.f32 (!%p2488_p10), %v1722_v53, %v1746_v47  ;;  %v4132_v47 = vsub.f32 (!%p2488_p10), %v4029_v30, %v1773_v12 }
 0x10a   : > { %3024 = vmatpush3.bf16.msra.mxu1 (!%p2488_p10), %v4013_v11  ;;  %3096 = vmatpush3.bf16.msra.mxu0 (!%p2488_p10), %v4013_v11 }
 0x10b   : > { %3025 = vmatprep.subr.bf16.mxu1 (!%p2488_p10), %v3488_v38  ;;  %3097 = vmatprep.subr.bf16.mxu0 (!%p2488_p10), %v3488_v38 }
 0x10e   : > { %3027 = vmatpush3.bf16.msra.mxu1 (!%p2488_p10), %v4017_v14  ;;  %3099 = vmatpush3.bf16.msra.mxu0 (!%p2488_p10), %v4017_v14 }
 0x10f   : > { %3028 = vmatprep.subr.bf16.mxu1 (!%p2488_p10), %v3488_v38  ;;  %3100 = vmatprep.subr.bf16.mxu0 (!%p2488_p10), %v3488_v38 }
 0x112   : > { %3030 = vmatpush3.bf16.msra.mxu1 (!%p2488_p10), %v4023_v26  ;;  %3102 = vmatpush3.bf16.msra.mxu0 (!%p2488_p10), %v4023_v26 }
 0x113   : > { %3031 = vmatprep.subr.bf16.mxu1 (!%p2488_p10), %v3488_v38  ;;  %3103 = vmatprep.subr.bf16.mxu0 (!%p2488_p10), %v3488_v38 }
 0x116   : > { %3033 = vmatpush3.bf16.msra.mxu1 (!%p2488_p10), %v4033_v17  ;;  %3105 = vmatpush3.bf16.msra.mxu0 (!%p2488_p10), %v4033_v17 }
 0x117   : > { %3034 = vmatprep.subr.bf16.mxu1 (!%p2488_p10), %v3488_v38  ;;  %3106 = vmatprep.subr.bf16.mxu0 (!%p2488_p10), %v3488_v38 }
 0x1c4   : > { %v814_v10 = vpop.f32.mrb[0].mxu1  ;;  %v1192_v24 = vpop.f32.mrb[0].mxu0 }
 0x1c5   : > { %v3166_v6 = vadd.f32 %v1192_v24, %v814_v10  ;;  %v816_v49 = vpop.f32.mrb[1].mxu1  ;;  %v1194_v50 = vpop.f32.mrb[1].mxu0  ;;  %v4052_v10 = vpack.c.bf16 (!%p2488_p10), %v1773_v12, %v1770_v34  ;;  %v1776_v24 = vand.u32 (!%p2488_p10), 4294901760, %v4039_v32 }
 0x1c6   : > { %v3169_v18 = vadd.f32 %v1194_v50, %v816_v49  ;;  %v4056_v49 = vld [vmem:[#allocation9 + $0x60] sm:$0xff] (!%p2488_p10)  ;;  %v4060_v50 = vld [vmem:[#allocation9 + $0x68] sm:$0xff] (!%p2488_p10) }
 0x1c7   : > { %v1782_v40 = vand.u32 (!%p2488_p10), 4294901760, %v4056_v49  ;;  %3036 = vmatpush3.bf16.msra.mxu1 (!%p2488_p10), %v4052_v10  ;;  %3108 = vmatpush3.bf16.msra.mxu0 (!%p2488_p10), %v4052_v10 }
 0x1c8   : > { %3037 = vmatprep.subr.bf16.mxu1 (!%p2488_p10), %v3488_v38  ;;  %3109 = vmatprep.subr.bf16.mxu0 (!%p2488_p10), %v3488_v38 }
 0x1d8   : > { %v1449_v0 = vpop.f32.mrb[2].mxu1  ;;  %v1687_v1 = vpop.f32.mrb[2].mxu0 }
 0x1d9   : > { %v3167_v63 = vadd.f32 %v3166_v6, %v1449_v0  ;;  %v1451_v28 = vpop.f32.mrb[3].mxu1  ;;  %v1689_v7 = vpop.f32.mrb[3].mxu0  ;;  %v1779_v6 = vand.u32 (!%p2488_p10), 4294901760, %v4041_v41  ;;  %v1785_v0 = vand.u32 (!%p2488_p10), 4294901760, %v4060_v50 }
 0x1da   : > { %v3170_v8 = vadd.f32 %v3169_v18, %v1451_v28  ;;  %v4062_v18 = vsub.f32 (!%p2488_p10), %v1724_v35, %v1752_v2  ;;  %v1846_v28 = vand.u32 (!%p2488_p10), 4294901760, %v4048_v62  ;;  %v4129_v35 = vsub.f32 (!%p2488_p10), %v4027_v5, %v1770_v34 }
 0x1db   : > { %v3168_v23 = vadd.f32 %v3167_v63, %v1687_v1  ;;  %v4077_v55 = vpack.c.bf16 (!%p2488_p10), %v1779_v6, %v1776_v24  ;;  %v4080_v1 = vld [vmem:[#allocation9 + $0x70] sm:$0xff] (!%p2488_p10)  ;;  %v4082_v63 = vld [vmem:[#allocation9 + $0x78] sm:$0xff] (!%p2488_p10)  ;;  %v4102_v57 = vpack.c.bf16 (!%p2488_p10), %v1785_v0, %v1782_v40 }
 0x1dc   : > { %v3171_v48 = vadd.f32 %v3170_v8, %v1689_v7  ;;  %v4088_v7 = vsub.f32 (!%p2488_p10), %v1726_v61, %v1758_v15  ;;  %v4090_v8 = vsub.f32 (!%p2488_p10), %v1727_v43, %v1761_v58  ;;  %v1895_v34 = vand.u32 (!%p2488_p10), 4294901760, %v4129_v35 }
 0x1dd   : > { %v1704_v9 = vadd.f32 %v3168_v23, %v1697_v16  ;;  %v1839_v16 = vand.u32 (!%p2488_p10), 4294901760, %v4043_v42  ;;  %v1788_v23 = vand.u32 (!%p2488_p10), 4294901760, %v4080_v1  ;;  %3039 = vmatpush3.bf16.msra.mxu1 (!%p2488_p10), %v4077_v55  ;;  %3111 = vmatpush3.bf16.msra.mxu0 (!%p2488_p10), %v4077_v55 }
 0x1de   : > { %v1705_v25 = vadd.f32 %v3171_v48, %v1701_v52  ;;  %v1791_v48 = vand.u32 (!%p2488_p10), 4294901760, %v4082_v63  ;;  %3040 = vmatprep.subr.bf16.mxu1 (!%p2488_p10), %v3488_v38  ;;  %3112 = vmatprep.subr.bf16.mxu0 (!%p2488_p10), %v3488_v38 }
 0x1df   : > { %v2487_v13 = vmul.f32 -1.442695, %v1704_v9  ;;  %v1840_v52 = vsub.f32 (!%p2488_p10), %v4043_v42, %v1839_v16  ;;  %v3119_v20 = vpack.c.bf16 (!%p2488_p10), %v1846_v28, %v1839_v16 }
 0x1e1   : > { %3284 = vpow2.f32 %v2487_v13  ;;  %v1853_v13 = vand.u32 (!%p2488_p10), 4294901760, %v4062_v18  ;;  %3042 = vmatpush3.bf16.msra.mxu1 (!%p2488_p10), %v4102_v57  ;;  %3114 = vmatpush3.bf16.msra.mxu0 (!%p2488_p10), %v4102_v57 }
 0x1e2   : > { %3043 = vmatprep.subr.bf16.mxu1 (!%p2488_p10), %v3488_v38  ;;  %3115 = vmatprep.subr.bf16.mxu0 (!%p2488_p10), %v3488_v38 }
 0x1eb   : > { %v3285_v60 = vpop.eup %3284 }
 0x1ec   : > { %v1709_v33 = vadd.f32 1.0, %v3285_v60  ;;  %v1847_v60 = vsub.f32 (!%p2488_p10), %v4048_v62, %v1846_v28 }
 0x1ee   : > { %3286 = vrcp.f32 %v1709_v33  ;;  %v1860_v33 = vand.u32 (!%p2488_p10), 4294901760, %v4064_v51  ;;  %v1848_v53 = vand.u32 (!%p2488_p10), 4294901760, %v1847_v60 }
 0x1ef   : > { %3288 = vtanh.f32 %v1705_v25  ;;  %v4109_v25 = vsub.f32 (!%p2488_p10), %v1728_v44, %v1764_v4  ;;  %v4150_v4 = vsub.f32 (!%p2488_p10), %v4041_v41, %v1779_v6  ;;  %v4161_v41 = vsub.f32 (!%p2488_p10), %v4056_v49, %v1782_v40 }
 0x1f0   : > { %v1861_v31 = vsub.f32 (!%p2488_p10), %v4064_v51, %v1860_v33  ;;  %v4166_v6 = vsub.f32 (!%p2488_p10), %v4060_v50, %v1785_v0  ;;  %v4181_v0 = vsub.f32 (!%p2488_p10), %v4080_v1, %v1788_v23 }
 0x1f1   : > { %v1881_v58 = vand.u32 (!%p2488_p10), 4294901760, %v4109_v25  ;;  %v1916_v50 = vand.u32 (!%p2488_p10), 4294901760, %v4150_v4 }
 0x1f2   : > { %v1862_v15 = vand.u32 (!%p2488_p10), 4294901760, %v1861_v31  ;;  %v1930_v1 = vand.u32 (!%p2488_p10), 4294901760, %v4166_v6 }
 0x1f3   : > { %v1882_v16 = vsub.f32 (!%p2488_p10), %v4109_v25, %v1881_v58  ;;  %v1917_v31 = vsub.f32 (!%p2488_p10), %v4150_v4, %v1916_v50 }
 0x1f5   : > { %v1883_v49 = vand.u32 (!%p2488_p10), 4294901760, %v1882_v16 }
 0x1f8   : > { %v3287_v27 = vpop.eup %3286 }
 0x1f9   : > { %v1713_v36 = vsub.f32 1.0, %v3287_v27  ;;  %v3289_v54 = vpop.eup %3288  ;;  %v1715_v46 = vmul.f32 %v3287_v27, %v4388_v45  ;;  %1721 = sbr.rel (%p2488_p10) target bundleno = 802 (0x322), region = 68  ;;  %v4111_v27 = vsub.f32 (!%p2488_p10), %v1729_v21, %v1767_v29  ;;  %v1867_v45 = vand.u32 (!%p2488_p10), 4294901760, %v4088_v7 }
 0x1fa   : > { %v4145_v21 = vsub.f32 (!%p2488_p10), %v4039_v32, %v1776_v24  ;;  %v3122_v29 = vpack.c.bf16 (!%p2488_p10), %v1860_v33, %v1853_v13  ;;  %v1902_v24 = vand.u32 (!%p2488_p10), 4294901760, %v4132_v47  ;;  %v4186_v33 = vsub.f32 (!%p2488_p10), %v4082_v63, %v1791_v48 }
 0x1fb   : > { %v1714_v37 = vmul.f32 %v3289_v54, %v1713_v36  ;;  %v1854_v54 = vsub.f32 (!%p2488_p10), %v4062_v18, %v1853_v13  ;;  %v1868_v39 = vsub.f32 (!%p2488_p10), %v4088_v7, %v1867_v45  ;;  %v1888_v44 = vand.u32 (!%p2488_p10), 4294901760, %v4111_v27 }
 0x1fc   : > { %v1896_v13 = vsub.f32 (!%p2488_p10), %v4129_v35, %v1895_v34  ;;  %v1903_v60 = vsub.f32 (!%p2488_p10), %v4132_v47, %v1902_v24  ;;  %v3131_v63 = vpack.c.bf16 (!%p2488_p10), %v1902_v24, %v1895_v34 }
 0x1fd   : > { %v4003_v3 = vadd.f32 %v1715_v46, %v1714_v37  ;;  %v1874_v46 = vand.u32 (!%p2488_p10), 4294901760, %v4090_v8  ;;  %v4123_v37 = vpack.c.bf16 (!%p2488_p10), %v1791_v48, %v1788_v23  ;;  %v1855_v2 = vand.u32 (!%p2488_p10), 4294901760, %v1854_v54 }
 0x1fe   : > { %v1869_v5 = vand.u32 (!%p2488_p10), 4294901760, %v1868_v39  ;;  %v1889_v32 = vsub.f32 (!%p2488_p10), %v4111_v27, %v1888_v44  ;;  %v1897_v54 = vand.u32 (!%p2488_p10), 4294901760, %v1896_v13  ;;  %v1931_v39 = vsub.f32 (!%p2488_p10), %v4166_v6, %v1930_v1 }
 0x1ff   : > { %1717 = vst [vmem:[#allocation2] sm:$0xff] %v4003_v3  ;;  %v4046_v56 = vand.u32 (!%p2488_p10), 4294901760, %v4003_v3  ;;  %v1875_v61 = vsub.f32 (!%p2488_p10), %v4090_v8, %v1874_v46  ;;  %3045 = vmatpush3.bf16.msra.mxu1 (!%p2488_p10), %v4123_v37  ;;  %3117 = vmatpush3.bf16.msra.mxu0 (!%p2488_p10), %v4123_v37  ;;  %v3050_v12 = vpack.c.bf16 (!%p2488_p10), %v1862_v15, %v1855_v2  ;;  %v1918_v2 = vand.u32 (!%p2488_p10), 4294901760, %v1917_v31 }
 0x200   : > { %3046 = vmatprep.subr.bf16.mxu1 %v3488_v38  ;;  %3118 = vmatprep.subr.bf16.mxu0 %v3488_v38  ;;  %v1890_v40 = vand.u32 4294901760, %v1889_v32 }
 0x201   : > { %v4069_v22 = vsub.f32 %v4003_v3, %v4046_v56  ;;  %v1841_v3 = vand.u32 4294901760, %v1840_v52  ;;  %v1876_v30 = vand.u32 4294901760, %v1875_v61  ;;  %v1909_v52 = vand.u32 4294901760, %v4145_v21 }
 0x202   : > { %v1944_v61 = vand.u32 4294901760, %v4186_v33 }
 0x203   : > { %v1828_v9 = vand.u32 4294901760, %v4069_v22  ;;  %v3047_v43 = vpack.c.bf16 %v1848_v53, %v1841_v3  ;;  %v3053_v28 = vpack.c.bf16 %v1876_v30, %v1869_v5  ;;  %v3056_v3 = vpack.c.bf16 %v1890_v40, %v1883_v49 }
 0x204   : > { %v1904_v53 = vand.u32 4294901760, %v1903_v60  ;;  %v1945_v5 = vsub.f32 %v4186_v33, %v1944_v61 }
 0x205   : > { %v1829_v36 = vsub.f32 %v4069_v22, %v1828_v9  ;;  %2734 = vmatmul.mubr.f32.vlgmr.msra.gmra.mrb[0].mxu0 %v1828_v9  ;;  %v3125_v9 = vpack.c.bf16 %v1874_v46, %v1867_v45  ;;  %v1910_v45 = vsub.f32 %v4145_v21, %v1909_v52  ;;  %v1923_v46 = vand.u32 4294901760, %v4161_v41 }
 0x206   : > { %3120 = vmatpush3.bf16.msra.mxu0 %v3119_v20  ;;  %2768 = vmatprep.mubr.msk.f32.mxu0 %vm3489_vm1, %v3490_v59  ;;  %v1937_v20 = vand.u32 4294901760, %v4181_v0  ;;  %v1946_v16 = vand.u32 4294901760, %v1945_v5 }
 0x207   : > { %v1830_v19 = vand.u32 4294901760, %v1829_v36  ;;  %3121 = vmatprep.subr.bf16.mxu0 %v3488_v38  ;;  %v3128_v36 = vpack.c.bf16 %v1888_v44, %v1881_v58  ;;  %v1911_v23 = vand.u32 4294901760, %v1910_v45  ;;  %v1924_v48 = vsub.f32 %v4161_v41, %v1923_v46 }
 0x208   : > { %v1932_v44 = vand.u32 4294901760, %v1931_v39  ;;  %v3137_v34 = vpack.c.bf16 %v1930_v1, %v1923_v46  ;;  %v3140_v24 = vpack.c.bf16 %v1944_v61, %v1937_v20 }
 0x209   : > { %2629 = vmatmul.mubr.f32.vlgmr.msra.gmra.mrb[0].mxu1 %v1830_v19  ;;  %v3059_v19 = vpack.c.bf16 %v1904_v53, %v1897_v54  ;;  %v1925_v15 = vand.u32 4294901760, %v1924_v48  ;;  %v3062_v58 = vpack.c.bf16 %v1918_v2, %v1911_v23 }
 0x20a   : > { %3048 = vmatpush3.bf16.msra.mxu1 %v3047_v43  ;;  %2663 = vmatprep.mubr.msk.f32.mxu1 %vm3489_vm1, %v3490_v59  ;;  %v3134_v43 = vpack.c.bf16 %v1916_v50, %v1909_v52 }
 0x20b   : > { %3049 = vmatprep.subr.bf16.mxu1 %v3488_v38  ;;  %3123 = vmatpush3.bf16.msra.mxu0 %v3122_v29  ;;  %v1938_v29 = vsub.f32 %v4181_v0, %v1937_v20  ;;  %v3065_v30 = vpack.c.bf16 %v1932_v44, %v1925_v15 }
 0x20c   : > { %3124 = vmatprep.subr.bf16.mxu0 %v3488_v38 }
 0x20e   : > { %3051 = vmatpush3.bf16.msra.mxu1 %v3050_v12  ;;  %v1939_v12 = vand.u32 4294901760, %v1938_v29 }
 0x20f   : > { %3052 = vmatprep.subr.bf16.mxu1 %v3488_v38  ;;  %3126 = vmatpush3.bf16.msra.mxu0 %v3125_v9  ;;  %v3074_v9 = vpack.c.bf16 %v4064_v51, %v4062_v18 }
 0x210   : > { %3127 = vmatprep.subr.bf16.mxu0 %v3488_v38  ;;  %v3068_v32 = vpack.c.bf16 %v1946_v16, %v1939_v12 }
 0x212   : > { %3054 = vmatpush3.bf16.msra.mxu1 %v3053_v28  ;;  %v3071_v28 = vpack.c.bf16 %v4048_v62, %v4043_v42  ;;  %v3077_v42 = vpack.c.bf16 %v4090_v8, %v4088_v7  ;;  %v2489_v62 = vld [vmem:[%s4300_s5] ss:$0 sm:$0xff] }
 0x213   : > { %3055 = vmatprep.subr.bf16.mxu1 %v3488_v38  ;;  %3129 = vmatpush3.bf16.msra.mxu0 %v3128_v36 }
 0x214   : > { %3130 = vmatprep.subr.bf16.mxu0 %v3488_v38 }
 0x216   : > { %3057 = vmatpush3.bf16.msra.mxu1 %v3056_v3 }
 0x217   : > { %3058 = vmatprep.subr.bf16.mxu1 %v3488_v38  ;;  %3132 = vmatpush3.bf16.msra.mxu0 %v3131_v63 }
 0x218   : > { %3133 = vmatprep.subr.bf16.mxu0 %v3488_v38 }
 0x21a   : > { %3060 = vmatpush3.bf16.msra.mxu1 %v3059_v19 }
 0x21b   : > { %3061 = vmatprep.subr.bf16.mxu1 %v3488_v38  ;;  %3135 = vmatpush3.bf16.msra.mxu0 %v3134_v43 }
 0x21c   : > { %3136 = vmatprep.subr.bf16.mxu0 %v3488_v38 }
 0x21e   : > { %3063 = vmatpush3.bf16.msra.mxu1 %v3062_v58 }
 0x21f   : > { %3064 = vmatprep.subr.bf16.mxu1 %v3488_v38  ;;  %3138 = vmatpush3.bf16.msra.mxu0 %v3137_v34 }
 0x220   : > { %3139 = vmatprep.subr.bf16.mxu0 %v3488_v38 }
 0x222   : > { %3066 = vmatpush3.bf16.msra.mxu1 %v3065_v30 }
 0x223   : > { %3067 = vmatprep.subr.bf16.mxu1 %v3488_v38  ;;  %3141 = vmatpush3.bf16.msra.mxu0 %v3140_v24 }
 0x224   : > { %3142 = vmatprep.subr.bf16.mxu0 %v3488_v38 }
 0x226   : > { %3069 = vmatpush3.bf16.msra.mxu1 %v3068_v32  ;;  %2769 = vmatmul.mubr.f32.vlgmr.msra.gmra.mrb[0].mxu0 %v4046_v56 }
 0x227   : > { %3070 = vmatprep.subr.bf16.mxu1 %v3488_v38  ;;  %3144 = vmatpush3.bf16.msra.mxu0 %v4013_v11  ;;  %v3080_v11 = vpack.c.bf16 %v4111_v27, %v4109_v25 }
 0x228   : > { %3145 = vmatprep.subr.bf16.mxu0 %v3488_v38  ;;  %2803 = vmatprep.mubr.msk.f32.mxu0 %vm3489_vm1, %v3490_v59 }
 0x229   : > { %2664 = vmatmul.mubr.f32.vlgmr.msra.gmra.mrb[0].mxu1 %v4046_v56 }
 0x22a   : > { %3072 = vmatpush3.bf16.msra.mxu1 %v3071_v28  ;;  %2698 = vmatprep.mubr.msk.f32.mxu1 %vm3489_vm1, %v3490_v59  ;;  %v3083_v59 = vpack.c.bf16 %v4132_v47, %v4129_v35 }
 0x22b   : > { %3073 = vmatprep.subr.bf16.mxu1 %v3488_v38  ;;  %3147 = vmatpush3.bf16.msra.mxu0 %v4017_v14  ;;  %v3086_v14 = vpack.c.bf16 %v4150_v4, %v4145_v21 }
 0x22c   : > { %3148 = vmatprep.subr.bf16.mxu0 %v3488_v38 }
 0x22e   : > { %3075 = vmatpush3.bf16.msra.mxu1 %v3074_v9 }
 0x22f   : > { %3076 = vmatprep.subr.bf16.mxu1 %v3488_v38  ;;  %3150 = vmatpush3.bf16.msra.mxu0 %v4023_v26  ;;  %v3089_v26 = vpack.c.bf16 %v4166_v6, %v4161_v41 }
 0x230   : > { %3151 = vmatprep.subr.bf16.mxu0 %v3488_v38 }
 0x232   : > { %3078 = vmatpush3.bf16.msra.mxu1 %v3077_v42 }
 0x233   : > { %3079 = vmatprep.subr.bf16.mxu1 %v3488_v38  ;;  %3153 = vmatpush3.bf16.msra.mxu0 %v4033_v17  ;;  %v3092_v17 = vpack.c.bf16 %v4186_v33, %v4181_v0 }
 0x234   : > { %3154 = vmatprep.subr.bf16.mxu0 %v3488_v38 }
 0x236   : > { %3081 = vmatpush3.bf16.msra.mxu1 %v3080_v11 }
 0x237   : > { %3082 = vmatprep.subr.bf16.mxu1 %v3488_v38  ;;  %3156 = vmatpush3.bf16.msra.mxu0 %v4052_v10 }
 0x238   : > { %3157 = vmatprep.subr.bf16.mxu0 %v3488_v38 }
 0x23a   : > { %3084 = vmatpush3.bf16.msra.mxu1 %v3083_v59 }
 0x23b   : > { %3085 = vmatprep.subr.bf16.mxu1 %v3488_v38  ;;  %3159 = vmatpush3.bf16.msra.mxu0 %v4077_v55 }
 0x23c   : > { %3160 = vmatprep.subr.bf16.mxu0 %v3488_v38 }
 0x23e   : > { %3087 = vmatpush3.bf16.msra.mxu1 %v3086_v14 }
 0x23f   : > { %3088 = vmatprep.subr.bf16.mxu1 %v3488_v38  ;;  %3162 = vmatpush3.bf16.msra.mxu0 %v4102_v57 }
 0x240   : > { %3163 = vmatprep.subr.bf16.mxu0 %v3488_v38 }
 0x242   : > { %3090 = vmatpush3.bf16.msra.mxu1 %v3089_v26 }
 0x243   : > { %3091 = vmatprep.subr.bf16.mxu1 %v3488_v38  ;;  %3165 = vmatpush3.bf16.msra.mxu0 %v4123_v37 }
 0x246   : > { %3093 = vmatpush3.bf16.msra.mxu1 %v3092_v17  ;;  %2804 = vmatmul.mubr.f32.vlgmr.msra.gmra.mrb[0].mxu0 %v4046_v56 }
 0x249   : > { %2699 = vmatmul.mubr.f32.vlgmr.msra.gmra.mrb[0].mxu1 %v4069_v22 }
 0x319   : > { %v2382_v18 = vpop.f32.mrb[0].mxu0 }
 0x31a   : > { %v2805_v7 = vpop.f32.mrb[1].mxu0 }
 0x31c   : > { %v2087_v10 = vpop.f32.mrb[0].mxu1 }
 0x31d   : > { %v3188_v51 = vadd.f32 %v2489_v62, %v2087_v10  ;;  %v2700_v55 = vpop.f32.mrb[1].mxu1 }
 0x31f   : > { %v3189_v8 = vadd.f32 %v3188_v51, %v2382_v18 }
 0x321   : > { %2386 = vst [vmem:[#allocation11] sm:$0xff] %v3189_v8 }
 0x322 PF: > { %p3237_p12 = scmp.eq.s32.totalorder %s3546_s25, 7  ;;  %s3491_s14 = smov [#allocation11]  }
 0x323   : > { %s2394_s24 = sshll.u32 %s3491_s14, 4  ;;  %s2395_s24 = int_to_ptr.vmem [resolvable:$true] %s2394_s24 }
 0x324   : > { %s3404_s8 = scalar_lea.vmem %s2395_s24, 128  ;;  %p3411_p9 = scmp.lt.s32.totalorder %s2395_s24, %s2395_s24 }
 0x325   : > { %p3405_p13 = scmp.ne.s32.totalorder %s2395_s24, %s3404_s8  ;;  %p3412_p11 = scmp.lt.s32.totalorder %s3404_s8, %s3404_s8 }
 0x327   : > { %p3406_p0 = pnand %p3405_p13, %p3237_p12  ;;  %p3413_p7 = por %p3412_p11, %p3411_p9 }
 0x329   : > { %p3407_p3 = pneg %p3406_p0 }
 0x32b   : > { %p3414_p2 = pnand %p3413_p7, %p3407_p3 }
 0x32d   : > { %3417 = shalt.err (!%p3414_p2)
}
 0x32e   : > { %s3418_s21 = scalar_lea.hbm %s4301_s6, 128 }
 0x32f   : > { %p3419_p1 = scmp.ne.s32.totalorder %s4301_s6, %s3418_s21  ;;  %p3424_p5 = scmp.lt.u32.totalorder %s3418_s21, %s4301_s6 }
 0x331   : > { %p3420_p8 = pnand %p3419_p1, %p3237_p12 }
 0x333   : > { %p3421_p4 = pneg %p3420_p8 }
 0x335   : > { %p3426_p6 = pnand %p3424_p5, %p3421_p4 }
 0x337   : > { %3429 = shalt.err (!%p3426_p6)
}
 0x338   : > { %3213 = dma.vmem_to_hbm [thread:$0]  (%p3237_p12), %s2395_s24, 128, %s4301_s6, [#allocation5]  }
 0x339   : > { %3459 = dma.done.wait (%p3237_p12), [#allocation5], 128  }
 0x33a   : > { %3461 = vsyncadd (%p3237_p12), [#allocation5], 4294967168 }
 0x33b PF: > { %p19_p10 = scmp.ge.s32.totalorder %s3649_s17, 10   ;;  %s4389_s21 = smov %s3468_s22 }
 0x33c   : > { %s4390_s22 = smov %s3472_s23  ;;  %s4391_s23 = smov %s3659_s19 }
 0x33d   : > { %s4392_s24 = smov %s3649_s17  ;;  %21 = sbr.rel (!%p19_p10) target bundleno = 6 (0x6), region = 101 }
 0x344   :  { %2407 = vsyncpa [#allocation4], 1 }
 0x345   :  { %2409 = vsyncpa [#allocation4 + $0x1], 1 }
 0x346   :  { %2410 = vsyncpa [#allocation7], 1 }
 0x347   :  { %2411 = vsyncpa [#allocation10], 1 }
 0x348   :  { %2412 = vsyncpa [#allocation5], 1 }
 0x349   :  { %2414 = vsyncpa [#allocation5 + $0x1], 1 }

</bundles_post_ra>
